<compile_context>
chip_gen: v6e
topology: v6e:2x2x1
jax: 0.10.0
libtpu: 0.0.40
codegen_flags: <defaults>
</compile_context>

<pallas_src>
import jax
import jax.numpy as jnp
from jax.experimental import pallas as pl
from jax.experimental.pallas import tpu as pltpu


_VMEM_LIMIT_BYTES = 48 * 1024 * 1024   # above all default scoped limits, below v7x physical


def _compiler_params(dimension_semantics):
    return pltpu.CompilerParams(dimension_semantics=dimension_semantics,
                                vmem_limit_bytes=_VMEM_LIMIT_BYTES)


def _pick_tile(dim, candidates=(512, 256, 128, 64, 32, 16, 8)):
    for c in candidates:
        if dim >= c and dim % c == 0:
            return c
    return dim   # fall back to full extent (always a legal block)


# ----------------------------------------------------------------------------
# Kernel 1: generic tiled matmul + bias (f32 accumulation), parallel over (M,N)
#   Used for (a) the hoisted x @ W_ih^T + b gate precompute over all T*B rows,
#   and (b) the vocab projection over all B*T rows.
# ----------------------------------------------------------------------------
def _matmul_bias_kernel(lhs_ref, rhs_ref, b_ref, out_ref):
    out_ref[...] = (jnp.dot(lhs_ref[...], rhs_ref[...],
                            preferred_element_type=jnp.float32)
                    + b_ref[...])


def _matmul_bias(lhs, rhs, bias):
    """(M, K) @ (K, N) + (1, N) -> (M, N) f32, parallel tiled over (M, N)."""
    M, K = lhs.shape
    N = rhs.shape[1]
    tm = _pick_tile(M)
    tn = _pick_tile(N)
    return pl.pallas_call(
        _matmul_bias_kernel,
        out_shape=jax.ShapeDtypeStruct((M, N), jnp.float32),
        grid_spec=pltpu.PrefetchScalarGridSpec(
            num_scalar_prefetch=0,
            grid=(M // tm, N // tn),
            in_specs=[
                pl.BlockSpec((tm, K), lambda i, j: (i, 0)),   # LHS row tile
                pl.BlockSpec((K, tn), lambda i, j: (0, j)),   # RHS col tile
                pl.BlockSpec((1, tn), lambda i, j: (0, j)),   # bias tile
            ],
            out_specs=pl.BlockSpec((tm, tn), lambda i, j: (i, j)),
        ),
        compiler_params=_compiler_params(("parallel", "parallel")),
    )(lhs, rhs, bias)


# ----------------------------------------------------------------------------
# Kernel 2: LSTM recurrence.  One kernel invocation per batch chunk; the time
# loop is internal (unrolled for short T), so there is no per-timestep pipeline
# prolog/epilog and the LLO scheduler can overlap consecutive steps.
# ----------------------------------------------------------------------------
def _lstm_recurrence_kernel(gx_ref, w_hh_ref, h_out_ref):
    T, Bc, H4 = gx_ref.shape
    H = H4 // 4
    w_hh = w_hh_ref[...]                       # hoisted loop-invariant load

    def step(t, carry):
        h, c = carry                           # f32 state, vreg-resident
        # gates = precomputed (x @ W_ih^T + b) + h @ W_hh^T   (f32 accumulate)
        gates = gx_ref[t] + jnp.dot(h.astype(w_hh.dtype), w_hh,
                                    preferred_element_type=jnp.float32)
        # PyTorch gate order: input, forget, cell(g), output.  f32 VPU/EUP math.
        i = jax.nn.sigmoid(gates[:, 0 * H:1 * H])
        f = jax.nn.sigmoid(gates[:, 1 * H:2 * H])
        g = jnp.tanh(gates[:, 2 * H:3 * H])
        o = jax.nn.sigmoid(gates[:, 3 * H:4 * H])
        c_new = f * c + i * g
        h_new = o * jnp.tanh(c_new)
        h_out_ref[t] = h_new.astype(h_out_ref.dtype)
        return h_new, c_new

    zeros = jnp.zeros((Bc, H), jnp.float32)    # nn.LSTM default zero state
    jax.lax.fori_loop(0, T, step, (zeros, zeros), unroll=(T <= 32))


def _lstm_recurrence(gates_x, w_hh_t, out_dtype):
    """gates_x: (T, B, 4H) f32; w_hh_t: (H, 4H) bf16 -> hidden states (T, B, H)."""
    T, B, H4 = gates_x.shape
    H = w_hh_t.shape[0]
    # Split the batch into two independent chunks when it tiles cleanly so the
    # two v7x TensorCores each run half the recurrence (harmless elsewhere).
    bc = B // 2 if (B >= 16 and B % 16 == 0) else B
    return pl.pallas_call(
        _lstm_recurrence_kernel,
        out_shape=jax.ShapeDtypeStruct((T, B, H), out_dtype),
        grid_spec=pltpu.PrefetchScalarGridSpec(
            num_scalar_prefetch=0,
            grid=(B // bc,),
            in_specs=[
                pl.BlockSpec((T, bc, H4), lambda b: (0, b, 0)),  # gates_x chunk
                # W_hh^T is grid-invariant (constant index_map => no re-DMA).
                # At realistic H, pipeline_mode=pl.Buffered(1) would also drop
                # its second VMEM buffer.
                pl.BlockSpec((H, H4), lambda b: (0, 0)),
            ],
            out_specs=pl.BlockSpec((T, bc, H), lambda b: (0, b, 0)),
        ),
        compiler_params=_compiler_params(("parallel",)),
    )(gates_x, w_hh_t)


# ----------------------------------------------------------------------------
# Wrapper: embedding gather + concat (glue); gate precompute, recurrence and
# vocab projection in Pallas.
# ----------------------------------------------------------------------------
def prepare_params(params, compute_dtype=jnp.bfloat16):
    """Pre-transpose weights once (layout plumbing) and cast matmul operands."""
    return {
        "embedding": params["embedding"].astype(compute_dtype),  # (V, E)
        "w_ih_t": params["w_ih"].T.astype(compute_dtype),         # (E, 4H)
        "w_hh_t": params["w_hh"].T.astype(compute_dtype),         # (H, 4H)
        "b_sum": params["b_sum"].astype(jnp.float32),              # (1, 4H)
        "w_lin_t": params["w_lin"].T.astype(compute_dtype),       # (H, V)
        "b_lin": params["b_lin"].astype(jnp.float32),              # (1, V)
    }


def decoder_rnn_forward(prep, features, captions):
    """features: (B, E) f32; captions: (B, L) int32 -> logits (B, L, V) f32."""
    emb = prep["embedding"]                     # (V, E) compute dtype
    cdt = emb.dtype
    E = emb.shape[1]
    H = prep["w_hh_t"].shape[0]
    V = prep["w_lin_t"].shape[1]
    B = features.shape[0]
    assert B % 8 == 0 and E % 128 == 0 and H % 128 == 0 and V % 128 == 0, (
        "shapes must be tile-aligned: B % 8 == 0 and E/H/V % 128 == 0")

    cap = captions[:, :-1]                      # drop last token (as in module)
    # Gather time-major directly: only the tiny int32 index array is transposed.
    word_embeds = emb[cap.T]                    # (L-1, B, E)
    feats = features.astype(cdt)[None]          # (1, B, E)
    inputs_tbe = jnp.concatenate([feats, word_embeds], axis=0)   # (T, B, E)
    T = inputs_tbe.shape[0]

    # Hoisted input projection for ALL timesteps at once; bias folded in here
    # so the serial loop carries no broadcast+add.
    gates_x = _matmul_bias(inputs_tbe.reshape(T * B, E),
                           prep["w_ih_t"], prep["b_sum"])        # (T*B, 4H) f32
    gates_x = gates_x.reshape(T, B, 4 * H)

    # Sequential part: only h @ W_hh^T per step; whole T loop in one kernel.
    h_tbh = _lstm_recurrence(gates_x, prep["w_hh_t"], out_dtype=cdt)  # (T, B, H)

    # Flatten hidden states to (B*T, H): this transposes only the small H-wide
    # tensor; the big logits tensor comes out already batch-major.
    h_bt = jnp.transpose(h_tbh, (1, 0, 2)).reshape(B * T, H)
    logits = _matmul_bias(h_bt, prep["w_lin_t"], prep["b_lin"])  # (B*T, V) f32
    return logits.reshape(B, T, V)


# ----------------------------------------------------------------------------
# Deterministic parameter init (mirrors the module's __init__ schemes)
# ----------------------------------------------------------------------------
def init_params(key, embed_size, hidden_size, vocab_size):
    k_emb, k_wih, k_whh, k_bih, k_bhh, k_lin = jax.random.split(key, 6)
    H, E, V = hidden_size, embed_size, vocab_size
    stdv = 1.0 / jnp.sqrt(H)                   # PyTorch LSTM default init
    xav = jnp.sqrt(6.0 / (H + V))              # xavier_uniform for Linear weight
    return {
        "embedding": jax.random.uniform(k_emb, (V, E), jnp.float32, -1.0, 1.0),
        "w_ih": jax.random.uniform(k_wih, (4 * H, E), jnp.float32, -stdv, stdv),
        "w_hh": jax.random.uniform(k_whh, (4 * H, H), jnp.float32, -stdv, stdv),
        "b_sum": (jax.random.uniform(k_bih, (1, 4 * H), jnp.float32, -stdv, stdv)
                  + jax.random.uniform(k_bhh, (1, 4 * H), jnp.float32, -stdv, stdv)),
        "w_lin": jax.random.uniform(k_lin, (V, H), jnp.float32, -xav, xav),
        "b_lin": jnp.zeros((1, V), jnp.float32),   # I.constant_(bias, 0)
    }


# ----------------------------------------------------------------------------
# Pure-JAX f32 reference (module semantics) for the correctness check
# ----------------------------------------------------------------------------
def decoder_rnn_reference(params, features, captions):
    emb = params["embedding"]
    captions = captions[:, :-1]
    inputs = jnp.concatenate([features[:, None, :], emb[captions]], axis=1)
    B, T, E = inputs.shape
    H = params["w_hh"].shape[1]

    def step(carry, x_t):
        h, c = carry
        gates = x_t @ params["w_ih"].T + h @ params["w_hh"].T + params["b_sum"][0]
        i = jax.nn.sigmoid(gates[:, 0 * H:1 * H])
        f = jax.nn.sigmoid(gates[:, 1 * H:2 * H])
        g = jnp.tanh(gates[:, 2 * H:3 * H])
        o = jax.nn.sigmoid(gates[:, 3 * H:4 * H])
        c = f * c + i * g
        h = o * jnp.tanh(c)
        return (h, c), h @ params["w_lin"].T + params["b_lin"][0]

    h0 = jnp.zeros((B, H), jnp.float32)
    _, logits_tbv = jax.lax.scan(step, (h0, h0), jnp.transpose(inputs, (1, 0, 2)))
    return jnp.transpose(logits_tbv, (1, 0, 2))


if __name__ == "__main__":
    # Small, tile-aligned shapes (B multiple of 8; E/H/V multiples of 128).
    B, L, E, H, V = 8, 8, 128, 128, 256

    key = jax.random.PRNGKey(0)
    k_params, k_feat, k_cap = jax.random.split(key, 3)
    params = init_params(k_params, embed_size=E, hidden_size=H, vocab_size=V)
    prep = prepare_params(params, compute_dtype=jnp.bfloat16)   # pre-transpose once

    features = jax.random.normal(k_feat, (B, E), jnp.float32)        # CNN features
    captions = jax.random.randint(k_cap, (B, L), 0, V, jnp.int32)    # token ids

    fwd = jax.jit(decoder_rnn_forward)
    out = jax.block_until_ready(fwd(prep, features, captions))
    assert out.shape == (B, L, V), out.shape

    ref = jax.block_until_ready(decoder_rnn_reference(params, features, captions))
    max_err = float(jnp.max(jnp.abs(out - ref)))
    # bf16 MXU inputs with f32 accumulation vs f32 reference -> loosened tolerance.
    assert jnp.allclose(out, ref, atol=5e-2, rtol=5e-2), (
        f"mismatch vs JAX reference (max abs err={max_err:.4g})")

    print("KERNEL_OK")
</pallas_src>

<mosaic_0001>
module attributes {stable_mosaic.version = 11 : i64} {
  func.func @_matmul_bias_kernel(%arg0: i32, %arg1: i32, %arg2: memref<64x128xbf16, #tpu.memory_space<vmem>>, %arg3: memref<128x256xbf16, #tpu.memory_space<vmem>>, %arg4: memref<1x256xf32, #tpu.memory_space<vmem>>, %arg5: memref<64x256xf32, #tpu.memory_space<vmem>>) attributes {dimension_semantics = [#tpu.dimension_semantics<parallel>, #tpu.dimension_semantics<parallel>], iteration_bounds = array<i64: 1, 1>, scalar_prefetch = 0 : i64, scratch_operands = 0 : i64, tpu.core_type = #tpu.core_type<tc>, window_params = [{transform_indices = @transform_0, window_bounds = array<i64: 64, 128>}, {transform_indices = @transform_1, window_bounds = array<i64: 128, 256>}, {transform_indices = @transform_2, window_bounds = array<i64: 1, 256>}, {transform_indices = @transform_3, window_bounds = array<i64: 64, 256>}]} {
    %c0 = arith.constant 0 : index
    %c0_0 = arith.constant 0 : index
    %0 = vector.load %arg2[%c0, %c0_0] : memref<64x128xbf16, #tpu.memory_space<vmem>>, vector<64x128xbf16>
    %c0_1 = arith.constant 0 : index
    %c0_2 = arith.constant 0 : index
    %1 = vector.load %arg3[%c0_1, %c0_2] : memref<128x256xbf16, #tpu.memory_space<vmem>>, vector<128x256xbf16>
    %cst = arith.constant dense<0.000000e+00> : vector<64x256xf32>
    %2 = tpu.matmul %0, %1, %cst {dimension_numbers = #tpu.dot_dimension_numbers<[1], [0], [0], [1], [0, 0, 1, 1], [], []>} : vector<64x128xbf16>, vector<128x256xbf16>, vector<64x256xf32> -> vector<64x256xf32>
    %c0_3 = arith.constant 0 : index
    %c0_4 = arith.constant 0 : index
    %3 = vector.load %arg4[%c0_3, %c0_4] : memref<1x256xf32, #tpu.memory_space<vmem>>, vector<1x256xf32>
    %4 = vector.broadcast %3 : vector<1x256xf32> to vector<64x256xf32>
    %5 = arith.addf %2, %4 : vector<64x256xf32>
    %c0_5 = arith.constant 0 : index
    %c0_6 = arith.constant 0 : index
    %6 = vector.load %arg5[%c0_5, %c0_6] : memref<64x256xf32, #tpu.memory_space<vmem>>, vector<64x256xf32>
    tpu.vector_store %arg5[%c0_5, %c0_6], %5 {strides = array<i32>} : memref<64x256xf32, #tpu.memory_space<vmem>>, vector<64x256xf32>,
    return
  }
  func.func @transform_0(%arg0: i32, %arg1: i32) -> (i32, i32) {
    %c0_i32 = arith.constant 0 : i32
    %c0_i32_0 = arith.constant 0 : i32
    return %arg0, %c0_i32 : i32, i32
  }
  func.func @transform_1(%arg0: i32, %arg1: i32) -> (i32, i32) {
    %c0_i32 = arith.constant 0 : i32
    %c0_i32_0 = arith.constant 0 : i32
    return %c0_i32, %arg1 : i32, i32
  }
  func.func @transform_2(%arg0: i32, %arg1: i32) -> (i32, i32) {
    %c0_i32 = arith.constant 0 : i32
    %c0_i32_0 = arith.constant 0 : i32
    return %c0_i32, %arg1 : i32, i32
  }
  func.func @transform_3(%arg0: i32, %arg1: i32) -> (i32, i32) {
    %c0_i32 = arith.constant 0 : i32
    return %arg0, %arg1 : i32, i32
  }
}

module attributes {stable_mosaic.version = 11 : i64} {
  func.func @_matmul_bias_kernel(%arg0: i32, %arg1: i32, %arg2: memref<64x128xbf16, #tpu.memory_space<vmem>>, %arg3: memref<128x512xbf16, #tpu.memory_space<vmem>>, %arg4: memref<1x512xf32, #tpu.memory_space<vmem>>, %arg5: memref<64x512xf32, #tpu.memory_space<vmem>>) attributes {dimension_semantics = [#tpu.dimension_semantics<parallel>, #tpu.dimension_semantics<parallel>], iteration_bounds = array<i64: 1, 1>, scalar_prefetch = 0 : i64, scratch_operands = 0 : i64, tpu.core_type = #tpu.core_type<tc>, window_params = [{transform_indices = @transform_0, window_bounds = array<i64: 64, 128>}, {transform_indices = @transform_1, window_bounds = array<i64: 128, 512>}, {transform_indices = @transform_2, window_bounds = array<i64: 1, 512>}, {transform_indices = @transform_3, window_bounds = array<i64: 64, 512>}]} {
    %c0 = arith.constant 0 : index
    %c0_0 = arith.constant 0 : index
    %0 = vector.load %arg2[%c0, %c0_0] : memref<64x128xbf16, #tpu.memory_space<vmem>>, vector<64x128xbf16>
    %c0_1 = arith.constant 0 : index
    %c0_2 = arith.constant 0 : index
    %1 = vector.load %arg3[%c0_1, %c0_2] : memref<128x512xbf16, #tpu.memory_space<vmem>>, vector<128x512xbf16>
    %cst = arith.constant dense<0.000000e+00> : vector<64x512xf32>
    %2 = tpu.matmul %0, %1, %cst {dimension_numbers = #tpu.dot_dimension_numbers<[1], [0], [0], [1], [0, 0, 1, 1], [], []>} : vector<64x128xbf16>, vector<128x512xbf16>, vector<64x512xf32> -> vector<64x512xf32>
    %c0_3 = arith.constant 0 : index
    %c0_4 = arith.constant 0 : index
    %3 = vector.load %arg4[%c0_3, %c0_4] : memref<1x512xf32, #tpu.memory_space<vmem>>, vector<1x512xf32>
    %4 = vector.broadcast %3 : vector<1x512xf32> to vector<64x512xf32>
    %5 = arith.addf %2, %4 : vector<64x512xf32>
    %c0_5 = arith.constant 0 : index
    %c0_6 = arith.constant 0 : index
    %6 = vector.load %arg5[%c0_5, %c0_6] : memref<64x512xf32, #tpu.memory_space<vmem>>, vector<64x512xf32>
    tpu.vector_store %arg5[%c0_5, %c0_6], %5 {strides = array<i32>} : memref<64x512xf32, #tpu.memory_space<vmem>>, vector<64x512xf32>,
    return
  }
  func.func @transform_0(%arg0: i32, %arg1: i32) -> (i32, i32) {
    %c0_i32 = arith.constant 0 : i32
    %c0_i32_0 = arith.constant 0 : i32
    return %arg0, %c0_i32 : i32, i32
  }
  func.func @transform_1(%arg0: i32, %arg1: i32) -> (i32, i32) {
    %c0_i32 = arith.constant 0 : i32
    %c0_i32_0 = arith.constant 0 : i32
    return %c0_i32, %arg1 : i32, i32
  }
  func.func @transform_2(%arg0: i32, %arg1: i32) -> (i32, i32) {
    %c0_i32 = arith.constant 0 : i32
    %c0_i32_0 = arith.constant 0 : i32
    return %c0_i32, %arg1 : i32, i32
  }
  func.func @transform_3(%arg0: i32, %arg1: i32) -> (i32, i32) {
    %c0_i32 = arith.constant 0 : i32
    return %arg0, %arg1 : i32, i32
  }
}

module attributes {stable_mosaic.version = 11 : i64} {
  func.func @_lstm_recurrence_kernel(%arg0: i32, %arg1: memref<8x8x512xf32, #tpu.memory_space<vmem>>, %arg2: memref<128x512xbf16, #tpu.memory_space<vmem>>, %arg3: memref<8x8x128xbf16, #tpu.memory_space<vmem>>) attributes {dimension_semantics = [#tpu.dimension_semantics<parallel>], iteration_bounds = array<i64: 1>, scalar_prefetch = 0 : i64, scratch_operands = 0 : i64, tpu.core_type = #tpu.core_type<tc>, window_params = [{transform_indices = @transform_0, window_bounds = array<i64: 8, 8, 512>}, {pipeline_mode = #tpu.pipeline_mode<synchronous>, transform_indices = @transform_1, window_bounds = array<i64: 128, 512>}, {transform_indices = @transform_2, window_bounds = array<i64: 8, 8, 128>}]} {
    %c0 = arith.constant 0 : index
    %c0_0 = arith.constant 0 : index
    %0 = vector.load %arg2[%c0, %c0_0] : memref<128x512xbf16, #tpu.memory_space<vmem>>, vector<128x512xbf16>
    %cst = arith.constant 0.000000e+00 : f32
    %1 = vector.broadcast %cst : f32 to vector<8x128xf32>
    %c0_i32 = arith.constant 0 : i32
    %2 = arith.index_cast %c0_i32 : i32 to index
    %c0_1 = arith.constant 0 : index
    %c0_2 = arith.constant 0 : index
    %3 = vector.load %arg1[%2, %c0_1, %c0_2] : memref<8x8x512xf32, #tpu.memory_space<vmem>>, vector<1x8x512xf32>
    %4 = vector.shape_cast %3 : vector<1x8x512xf32> to vector<8x512xf32>
    %5 = arith.truncf %1 : vector<8x128xf32> to vector<8x128xbf16>
    %cst_3 = arith.constant dense<0.000000e+00> : vector<8x512xf32>
    %6 = tpu.matmul %5, %0, %cst_3 {dimension_numbers = #tpu.dot_dimension_numbers<[1], [0], [0], [1], [0, 0, 1, 1], [], []>} : vector<8x128xbf16>, vector<128x512xbf16>, vector<8x512xf32> -> vector<8x512xf32>
    %7 = arith.addf %4, %6 : vector<8x512xf32>
    %8 = vector.extract_strided_slice %7 {offsets = [0, 0], sizes = [8, 128], strides = [1, 1]} : vector<8x512xf32> to vector<8x128xf32>
    %9 = arith.negf %8 : vector<8x128xf32>
    %10 = math.exp %9 : vector<8x128xf32>
    %cst_4 = arith.constant 1.000000e+00 : f32
    %11 = vector.broadcast %cst_4 : f32 to vector<8x128xf32>
    %12 = arith.addf %11, %10 : vector<8x128xf32>
    %13 = arith.divf %11, %12 : vector<8x128xf32>
    %14 = vector.extract_strided_slice %7 {offsets = [0, 128], sizes = [8, 128], strides = [1, 1]} : vector<8x512xf32> to vector<8x128xf32>
    %15 = arith.negf %14 : vector<8x128xf32>
    %16 = math.exp %15 : vector<8x128xf32>
    %cst_5 = arith.constant 1.000000e+00 : f32
    %17 = vector.broadcast %cst_5 : f32 to vector<8x128xf32>
    %18 = arith.addf %17, %16 : vector<8x128xf32>
    %19 = arith.divf %17, %18 : vector<8x128xf32>
    %20 = vector.extract_strided_slice %7 {offsets = [0, 256], sizes = [8, 128], strides = [1, 1]} : vector<8x512xf32> to vector<8x128xf32>
    %21 = math.tanh %20 : vector<8x128xf32>
    %22 = vector.extract_strided_slice %7 {offsets = [0, 384], sizes = [8, 128], strides = [1, 1]} : vector<8x512xf32> to vector<8x128xf32>
    %23 = arith.negf %22 : vector<8x128xf32>
    %24 = math.exp %23 : vector<8x128xf32>
    %cst_6 = arith.constant 1.000000e+00 : f32
    %25 = vector.broadcast %cst_6 : f32 to vector<8x128xf32>
    %26 = arith.addf %25, %24 : vector<8x128xf32>
    %27 = arith.divf %25, %26 : vector<8x128xf32>
    %28 = arith.mulf %19, %1 : vector<8x128xf32>
    %29 = arith.mulf %13, %21 : vector<8x128xf32>
    %30 = arith.addf %28, %29 : vector<8x128xf32>
    %31 = math.tanh %30 : vector<8x128xf32>
    %32 = arith.mulf %27, %31 : vector<8x128xf32>
    %33 = arith.truncf %32 : vector<8x128xf32> to vector<8x128xbf16>
    %34 = arith.index_cast %c0_i32 : i32 to index
    %c0_7 = arith.constant 0 : index
    %c0_8 = arith.constant 0 : index
    %35 = vector.load %arg3[%34, %c0_7, %c0_8] : memref<8x8x128xbf16, #tpu.memory_space<vmem>>, vector<1x8x128xbf16>
    %36 = vector.shape_cast %35 : vector<1x8x128xbf16> to vector<8x128xbf16>
    %37 = vector.shape_cast %33 : vector<8x128xbf16> to vector<1x8x128xbf16>
    tpu.vector_store %arg3[%34, %c0_7, %c0_8], %37 {strides = array<i32>} : memref<8x8x128xbf16, #tpu.memory_space<vmem>>, vector<1x8x128xbf16>,
    %c1_i32 = arith.constant 1 : i32
    %38 = arith.index_cast %c1_i32 : i32 to index
    %c0_9 = arith.constant 0 : index
    %c0_10 = arith.constant 0 : index
    %39 = vector.load %arg1[%38, %c0_9, %c0_10] : memref<8x8x512xf32, #tpu.memory_space<vmem>>, vector<1x8x512xf32>
    %40 = vector.shape_cast %39 : vector<1x8x512xf32> to vector<8x512xf32>
    %41 = arith.truncf %32 : vector<8x128xf32> to vector<8x128xbf16>
    %cst_11 = arith.constant dense<0.000000e+00> : vector<8x512xf32>
    %42 = tpu.matmul %41, %0, %cst_11 {dimension_numbers = #tpu.dot_dimension_numbers<[1], [0], [0], [1], [0, 0, 1, 1], [], []>} : vector<8x128xbf16>, vector<128x512xbf16>, vector<8x512xf32> -> vector<8x512xf32>
    %43 = arith.addf %40, %42 : vector<8x512xf32>
    %44 = vector.extract_strided_slice %43 {offsets = [0, 0], sizes = [8, 128], strides = [1, 1]} : vector<8x512xf32> to vector<8x128xf32>
    %45 = arith.negf %44 : vector<8x128xf32>
    %46 = math.exp %45 : vector<8x128xf32>
    %cst_12 = arith.constant 1.000000e+00 : f32
    %47 = vector.broadcast %cst_12 : f32 to vector<8x128xf32>
    %48 = arith.addf %47, %46 : vector<8x128xf32>
    %49 = arith.divf %47, %48 : vector<8x128xf32>
    %50 = vector.extract_strided_slice %43 {offsets = [0, 128], sizes = [8, 128], strides = [1, 1]} : vector<8x512xf32> to vector<8x128xf32>
    %51 = arith.negf %50 : vector<8x128xf32>
    %52 = math.exp %51 : vector<8x128xf32>
    %cst_13 = arith.constant 1.000000e+00 : f32
    %53 = vector.broadcast %cst_13 : f32 to vector<8x128xf32>
    %54 = arith.addf %53, %52 : vector<8x128xf32>
    %55 = arith.divf %53, %54 : vector<8x128xf32>
    %56 = vector.extract_strided_slice %43 {offsets = [0, 256], sizes = [8, 128], strides = [1, 1]} : vector<8x512xf32> to vector<8x128xf32>
    %57 = math.tanh %56 : vector<8x128xf32>
    %58 = vector.extract_strided_slice %43 {offsets = [0, 384], sizes = [8, 128], strides = [1, 1]} : vector<8x512xf32> to vector<8x128xf32>
    %59 = arith.negf %58 : vector<8x128xf32>
    %60 = math.exp %59 : vector<8x128xf32>
    %cst_14 = arith.constant 1.000000e+00 : f32
    %61 = vector.broadcast %cst_14 : f32 to vector<8x128xf32>
    %62 = arith.addf %61, %60 : vector<8x128xf32>
    %63 = arith.divf %61, %62 : vector<8x128xf32>
    %64 = arith.mulf %55, %30 : vector<8x128xf32>
    %65 = arith.mulf %49, %57 : vector<8x128xf32>
    %66 = arith.addf %64, %65 : vector<8x128xf32>
    %67 = math.tanh %66 : vector<8x128xf32>
    %68 = arith.mulf %63, %67 : vector<8x128xf32>
    %69 = arith.truncf %68 : vector<8x128xf32> to vector<8x128xbf16>
    %70 = arith.index_cast %c1_i32 : i32 to index
    %c0_15 = arith.constant 0 : index
    %c0_16 = arith.constant 0 : index
    %71 = vector.load %arg3[%70, %c0_15, %c0_16] : memref<8x8x128xbf16, #tpu.memory_space<vmem>>, vector<1x8x128xbf16>
    %72 = vector.shape_cast %71 : vector<1x8x128xbf16> to vector<8x128xbf16>
    %73 = vector.shape_cast %69 : vector<8x128xbf16> to vector<1x8x128xbf16>
    tpu.vector_store %arg3[%70, %c0_15, %c0_16], %73 {strides = array<i32>} : memref<8x8x128xbf16, #tpu.memory_space<vmem>>, vector<1x8x128xbf16>,
    %c2_i32 = arith.constant 2 : i32
    %74 = arith.index_cast %c2_i32 : i32 to index
    %c0_17 = arith.constant 0 : index
    %c0_18 = arith.constant 0 : index
    %75 = vector.load %arg1[%74, %c0_17, %c0_18] : memref<8x8x512xf32, #tpu.memory_space<vmem>>, vector<1x8x512xf32>
    %76 = vector.shape_cast %75 : vector<1x8x512xf32> to vector<8x512xf32>
    %77 = arith.truncf %68 : vector<8x128xf32> to vector<8x128xbf16>
    %cst_19 = arith.constant dense<0.000000e+00> : vector<8x512xf32>
    %78 = tpu.matmul %77, %0, %cst_19 {dimension_numbers = #tpu.dot_dimension_numbers<[1], [0], [0], [1], [0, 0, 1, 1], [], []>} : vector<8x128xbf16>, vector<128x512xbf16>, vector<8x512xf32> -> vector<8x512xf32>
    %79 = arith.addf %76, %78 : vector<8x512xf32>
    %80 = vector.extract_strided_slice %79 {offsets = [0, 0], sizes = [8, 128], strides = [1, 1]} : vector<8x512xf32> to vector<8x128xf32>
    %81 = arith.negf %80 : vector<8x128xf32>
    %82 = math.exp %81 : vector<8x128xf32>
    %cst_20 = arith.constant 1.000000e+00 : f32
    %83 = vector.broadcast %cst_20 : f32 to vector<8x128xf32>
    %84 = arith.addf %83, %82 : vector<8x128xf32>
    %85 = arith.divf %83, %84 : vector<8x128xf32>
    %86 = vector.extract_strided_slice %79 {offsets = [0, 128], sizes = [8, 128], strides = [1, 1]} : vector<8x512xf32> to vector<8x128xf32>
    %87 = arith.negf %86 : vector<8x128xf32>
    %88 = math.exp %87 : vector<8x128xf32>
    %cst_21 = arith.constant 1.000000e+00 : f32
    %89 = vector.broadcast %cst_21 : f32 to vector<8x128xf32>
    %90 = arith.addf %89, %88 : vector<8x128xf32>
    %91 = arith.divf %89, %90 : vector<8x128xf32>
    %92 = vector.extract_strided_slice %79 {offsets = [0, 256], sizes = [8, 128], strides = [1, 1]} : vector<8x512xf32> to vector<8x128xf32>
    %93 = math.tanh %92 : vector<8x128xf32>
    %94 = vector.extract_strided_slice %79 {offsets = [0, 384], sizes = [8, 128], strides = [1, 1]} : vector<8x512xf32> to vector<8x128xf32>
    %95 = arith.negf %94 : vector<8x128xf32>
    %96 = math.exp %95 : vector<8x128xf32>
    %cst_22 = arith.constant 1.000000e+00 : f32
    %97 = vector.broadcast %cst_22 : f32 to vector<8x128xf32>
    %98 = arith.addf %97, %96 : vector<8x128xf32>
    %99 = arith.divf %97, %98 : vector<8x128xf32>
    %100 = arith.mulf %91, %66 : vector<8x128xf32>
    %101 = arith.mulf %85, %93 : vector<8x128xf32>
    %102 = arith.addf %100, %101 : vector<8x128xf32>
    %103 = math.tanh %102 : vector<8x128xf32>
    %104 = arith.mulf %99, %103 : vector<8x128xf32>
    %105 = arith.truncf %104 : vector<8x128xf32> to vector<8x128xbf16>
    %106 = arith.index_cast %c2_i32 : i32 to index
    %c0_23 = arith.constant 0 : index
    %c0_24 = arith.constant 0 : index
    %107 = vector.load %arg3[%106, %c0_23, %c0_24] : memref<8x8x128xbf16, #tpu.memory_space<vmem>>, vector<1x8x128xbf16>
    %108 = vector.shape_cast %107 : vector<1x8x128xbf16> to vector<8x128xbf16>
    %109 = vector.shape_cast %105 : vector<8x128xbf16> to vector<1x8x128xbf16>
    tpu.vector_store %arg3[%106, %c0_23, %c0_24], %109 {strides = array<i32>} : memref<8x8x128xbf16, #tpu.memory_space<vmem>>, vector<1x8x128xbf16>,
    %c3_i32 = arith.constant 3 : i32
    %110 = arith.index_cast %c3_i32 : i32 to index
    %c0_25 = arith.constant 0 : index
    %c0_26 = arith.constant 0 : index
    %111 = vector.load %arg1[%110, %c0_25, %c0_26] : memref<8x8x512xf32, #tpu.memory_space<vmem>>, vector<1x8x512xf32>
    %112 = vector.shape_cast %111 : vector<1x8x512xf32> to vector<8x512xf32>
    %113 = arith.truncf %104 : vector<8x128xf32> to vector<8x128xbf16>
    %cst_27 = arith.constant dense<0.000000e+00> : vector<8x512xf32>
    %114 = tpu.matmul %113, %0, %cst_27 {dimension_numbers = #tpu.dot_dimension_numbers<[1], [0], [0], [1], [0, 0, 1, 1], [], []>} : vector<8x128xbf16>, vector<128x512xbf16>, vector<8x512xf32> -> vector<8x512xf32>
    %115 = arith.addf %112, %114 : vector<8x512xf32>
    %116 = vector.extract_strided_slice %115 {offsets = [0, 0], sizes = [8, 128], strides = [1, 1]} : vector<8x512xf32> to vector<8x128xf32>
    %117 = arith.negf %116 : vector<8x128xf32>
    %118 = math.exp %117 : vector<8x128xf32>
    %cst_28 = arith.constant 1.000000e+00 : f32
    %119 = vector.broadcast %cst_28 : f32 to vector<8x128xf32>
    %120 = arith.addf %119, %118 : vector<8x128xf32>
    %121 = arith.divf %119, %120 : vector<8x128xf32>
    %122 = vector.extract_strided_slice %115 {offsets = [0, 128], sizes = [8, 128], strides = [1, 1]} : vector<8x512xf32> to vector<8x128xf32>
    %123 = arith.negf %122 : vector<8x128xf32>
    %124 = math.exp %123 : vector<8x128xf32>
    %cst_29 = arith.constant 1.000000e+00 : f32
    %125 = vector.broadcast %cst_29 : f32 to vector<8x128xf32>
    %126 = arith.addf %125, %124 : vector<8x128xf32>
    %127 = arith.divf %125, %126 : vector<8x128xf32>
    %128 = vector.extract_strided_slice %115 {offsets = [0, 256], sizes = [8, 128], strides = [1, 1]} : vector<8x512xf32> to vector<8x128xf32>
    %129 = math.tanh %128 : vector<8x128xf32>
    %130 = vector.extract_strided_slice %115 {offsets = [0, 384], sizes = [8, 128], strides = [1, 1]} : vector<8x512xf32> to vector<8x128xf32>
    %131 = arith.negf %130 : vector<8x128xf32>
    %132 = math.exp %131 : vector<8x128xf32>
    %cst_30 = arith.constant 1.000000e+00 : f32
    %133 = vector.broadcast %cst_30 : f32 to vector<8x128xf32>
    %134 = arith.addf %133, %132 : vector<8x128xf32>
    %135 = arith.divf %133, %134 : vector<8x128xf32>
    %136 = arith.mulf %127, %102 : vector<8x128xf32>
    %137 = arith.mulf %121, %129 : vector<8x128xf32>
    %138 = arith.addf %136, %137 : vector<8x128xf32>
    %139 = math.tanh %138 : vector<8x128xf32>
    %140 = arith.mulf %135, %139 : vector<8x128xf32>
    %141 = arith.truncf %140 : vector<8x128xf32> to vector<8x128xbf16>
    %142 = arith.index_cast %c3_i32 : i32 to index
    %c0_31 = arith.constant 0 : index
    %c0_32 = arith.constant 0 : index
    %143 = vector.load %arg3[%142, %c0_31, %c0_32] : memref<8x8x128xbf16, #tpu.memory_space<vmem>>, vector<1x8x128xbf16>
    %144 = vector.shape_cast %143 : vector<1x8x128xbf16> to vector<8x128xbf16>
    %145 = vector.shape_cast %141 : vector<8x128xbf16> to vector<1x8x128xbf16>
    tpu.vector_store %arg3[%142, %c0_31, %c0_32], %145 {strides = array<i32>} : memref<8x8x128xbf16, #tpu.memory_space<vmem>>, vector<1x8x128xbf16>,
    %c4_i32 = arith.constant 4 : i32
    %146 = arith.index_cast %c4_i32 : i32 to index
    %c0_33 = arith.constant 0 : index
    %c0_34 = arith.constant 0 : index
    %147 = vector.load %arg1[%146, %c0_33, %c0_34] : memref<8x8x512xf32, #tpu.memory_space<vmem>>, vector<1x8x512xf32>
    %148 = vector.shape_cast %147 : vector<1x8x512xf32> to vector<8x512xf32>
    %149 = arith.truncf %140 : vector<8x128xf32> to vector<8x128xbf16>
    %cst_35 = arith.constant dense<0.000000e+00> : vector<8x512xf32>
    %150 = tpu.matmul %149, %0, %cst_35 {dimension_numbers = #tpu.dot_dimension_numbers<[1], [0], [0], [1], [0, 0, 1, 1], [], []>} : vector<8x128xbf16>, vector<128x512xbf16>, vector<8x512xf32> -> vector<8x512xf32>
    %151 = arith.addf %148, %150 : vector<8x512xf32>
    %152 = vector.extract_strided_slice %151 {offsets = [0, 0], sizes = [8, 128], strides = [1, 1]} : vector<8x512xf32> to vector<8x128xf32>
    %153 = arith.negf %152 : vector<8x128xf32>
    %154 = math.exp %153 : vector<8x128xf32>
    %cst_36 = arith.constant 1.000000e+00 : f32
    %155 = vector.broadcast %cst_36 : f32 to vector<8x128xf32>
    %156 = arith.addf %155, %154 : vector<8x128xf32>
    %157 = arith.divf %155, %156 : vector<8x128xf32>
    %158 = vector.extract_strided_slice %151 {offsets = [0, 128], sizes = [8, 128], strides = [1, 1]} : vector<8x512xf32> to vector<8x128xf32>
    %159 = arith.negf %158 : vector<8x128xf32>
    %160 = math.exp %159 : vector<8x128xf32>
    %cst_37 = arith.constant 1.000000e+00 : f32
    %161 = vector.broadcast %cst_37 : f32 to vector<8x128xf32>
    %162 = arith.addf %161, %160 : vector<8x128xf32>
    %163 = arith.divf %161, %162 : vector<8x128xf32>
    %164 = vector.extract_strided_slice %151 {offsets = [0, 256], sizes = [8, 128], strides = [1, 1]} : vector<8x512xf32> to vector<8x128xf32>
    %165 = math.tanh %164 : vector<8x128xf32>
    %166 = vector.extract_strided_slice %151 {offsets = [0, 384], sizes = [8, 128], strides = [1, 1]} : vector<8x512xf32> to vector<8x128xf32>
    %167 = arith.negf %166 : vector<8x128xf32>
    %168 = math.exp %167 : vector<8x128xf32>
    %cst_38 = arith.constant 1.000000e+00 : f32
    %169 = vector.broadcast %cst_38 : f32 to vector<8x128xf32>
    %170 = arith.addf %169, %168 : vector<8x128xf32>
    %171 = arith.divf %169, %170 : vector<8x128xf32>
    %172 = arith.mulf %163, %138 : vector<8x128xf32>
    %173 = arith.mulf %157, %165 : vector<8x128xf32>
    %174 = arith.addf %172, %173 : vector<8x128xf32>
    %175 = math.tanh %174 : vector<8x128xf32>
    %176 = arith.mulf %171, %175 : vector<8x128xf32>
    %177 = arith.truncf %176 : vector<8x128xf32> to vector<8x128xbf16>
    %178 = arith.index_cast %c4_i32 : i32 to index
    %c0_39 = arith.constant 0 : index
    %c0_40 = arith.constant 0 : index
    %179 = vector.load %arg3[%178, %c0_39, %c0_40] : memref<8x8x128xbf16, #tpu.memory_space<vmem>>, vector<1x8x128xbf16>
    %180 = vector.shape_cast %179 : vector<1x8x128xbf16> to vector<8x128xbf16>
    %181 = vector.shape_cast %177 : vector<8x128xbf16> to vector<1x8x128xbf16>
    tpu.vector_store %arg3[%178, %c0_39, %c0_40], %181 {strides = array<i32>} : memref<8x8x128xbf16, #tpu.memory_space<vmem>>, vector<1x8x128xbf16>,
    %c5_i32 = arith.constant 5 : i32
    %182 = arith.index_cast %c5_i32 : i32 to index
    %c0_41 = arith.constant 0 : index
    %c0_42 = arith.constant 0 : index
    %183 = vector.load %arg1[%182, %c0_41, %c0_42] : memref<8x8x512xf32, #tpu.memory_space<vmem>>, vector<1x8x512xf32>
    %184 = vector.shape_cast %183 : vector<1x8x512xf32> to vector<8x512xf32>
    %185 = arith.truncf %176 : vector<8x128xf32> to vector<8x128xbf16>
    %cst_43 = arith.constant dense<0.000000e+00> : vector<8x512xf32>
    %186 = tpu.matmul %185, %0, %cst_43 {dimension_numbers = #tpu.dot_dimension_numbers<[1], [0], [0], [1], [0, 0, 1, 1], [], []>} : vector<8x128xbf16>, vector<128x512xbf16>, vector<8x512xf32> -> vector<8x512xf32>
    %187 = arith.addf %184, %186 : vector<8x512xf32>
    %188 = vector.extract_strided_slice %187 {offsets = [0, 0], sizes = [8, 128], strides = [1, 1]} : vector<8x512xf32> to vector<8x128xf32>
    %189 = arith.negf %188 : vector<8x128xf32>
    %190 = math.exp %189 : vector<8x128xf32>
    %cst_44 = arith.constant 1.000000e+00 : f32
    %191 = vector.broadcast %cst_44 : f32 to vector<8x128xf32>
    %192 = arith.addf %191, %190 : vector<8x128xf32>
    %193 = arith.divf %191, %192 : vector<8x128xf32>
    %194 = vector.extract_strided_slice %187 {offsets = [0, 128], sizes = [8, 128], strides = [1, 1]} : vector<8x512xf32> to vector<8x128xf32>
    %195 = arith.negf %194 : vector<8x128xf32>
    %196 = math.exp %195 : vector<8x128xf32>
    %cst_45 = arith.constant 1.000000e+00 : f32
    %197 = vector.broadcast %cst_45 : f32 to vector<8x128xf32>
    %198 = arith.addf %197, %196 : vector<8x128xf32>
    %199 = arith.divf %197, %198 : vector<8x128xf32>
    %200 = vector.extract_strided_slice %187 {offsets = [0, 256], sizes = [8, 128], strides = [1, 1]} : vector<8x512xf32> to vector<8x128xf32>
    %201 = math.tanh %200 : vector<8x128xf32>
    %202 = vector.extract_strided_slice %187 {offsets = [0, 384], sizes = [8, 128], strides = [1, 1]} : vector<8x512xf32> to vector<8x128xf32>
    %203 = arith.negf %202 : vector<8x128xf32>
    %204 = math.exp %203 : vector<8x128xf32>
    %cst_46 = arith.constant 1.000000e+00 : f32
    %205 = vector.broadcast %cst_46 : f32 to vector<8x128xf32>
    %206 = arith.addf %205, %204 : vector<8x128xf32>
    %207 = arith.divf %205, %206 : vector<8x128xf32>
    %208 = arith.mulf %199, %174 : vector<8x128xf32>
    %209 = arith.mulf %193, %201 : vector<8x128xf32>
    %210 = arith.addf %208, %209 : vector<8x128xf32>
    %211 = math.tanh %210 : vector<8x128xf32>
    %212 = arith.mulf %207, %211 : vector<8x128xf32>
    %213 = arith.truncf %212 : vector<8x128xf32> to vector<8x128xbf16>
    %214 = arith.index_cast %c5_i32 : i32 to index
    %c0_47 = arith.constant 0 : index
    %c0_48 = arith.constant 0 : index
    %215 = vector.load %arg3[%214, %c0_47, %c0_48] : memref<8x8x128xbf16, #tpu.memory_space<vmem>>, vector<1x8x128xbf16>
    %216 = vector.shape_cast %215 : vector<1x8x128xbf16> to vector<8x128xbf16>
    %217 = vector.shape_cast %213 : vector<8x128xbf16> to vector<1x8x128xbf16>
    tpu.vector_store %arg3[%214, %c0_47, %c0_48], %217 {strides = array<i32>} : memref<8x8x128xbf16, #tpu.memory_space<vmem>>, vector<1x8x128xbf16>,
    %c6_i32 = arith.constant 6 : i32
    %218 = arith.index_cast %c6_i32 : i32 to index
    %c0_49 = arith.constant 0 : index
    %c0_50 = arith.constant 0 : index
    %219 = vector.load %arg1[%218, %c0_49, %c0_50] : memref<8x8x512xf32, #tpu.memory_space<vmem>>, vector<1x8x512xf32>
    %220 = vector.shape_cast %219 : vector<1x8x512xf32> to vector<8x512xf32>
    %221 = arith.truncf %212 : vector<8x128xf32> to vector<8x128xbf16>
    %cst_51 = arith.constant dense<0.000000e+00> : vector<8x512xf32>
    %222 = tpu.matmul %221, %0, %cst_51 {dimension_numbers = #tpu.dot_dimension_numbers<[1], [0], [0], [1], [0, 0, 1, 1], [], []>} : vector<8x128xbf16>, vector<128x512xbf16>, vector<8x512xf32> -> vector<8x512xf32>
    %223 = arith.addf %220, %222 : vector<8x512xf32>
    %224 = vector.extract_strided_slice %223 {offsets = [0, 0], sizes = [8, 128], strides = [1, 1]} : vector<8x512xf32> to vector<8x128xf32>
    %225 = arith.negf %224 : vector<8x128xf32>
    %226 = math.exp %225 : vector<8x128xf32>
    %cst_52 = arith.constant 1.000000e+00 : f32
    %227 = vector.broadcast %cst_52 : f32 to vector<8x128xf32>
    %228 = arith.addf %227, %226 : vector<8x128xf32>
    %229 = arith.divf %227, %228 : vector<8x128xf32>
    %230 = vector.extract_strided_slice %223 {offsets = [0, 128], sizes = [8, 128], strides = [1, 1]} : vector<8x512xf32> to vector<8x128xf32>
    %231 = arith.negf %230 : vector<8x128xf32>
    %232 = math.exp %231 : vector<8x128xf32>
    %cst_53 = arith.constant 1.000000e+00 : f32
    %233 = vector.broadcast %cst_53 : f32 to vector<8x128xf32>
    %234 = arith.addf %233, %232 : vector<8x128xf32>
    %235 = arith.divf %233, %234 : vector<8x128xf32>
    %236 = vector.extract_strided_slice %223 {offsets = [0, 256], sizes = [8, 128], strides = [1, 1]} : vector<8x512xf32> to vector<8x128xf32>
    %237 = math.tanh %236 : vector<8x128xf32>
    %238 = vector.extract_strided_slice %223 {offsets = [0, 384], sizes = [8, 128], strides = [1, 1]} : vector<8x512xf32> to vector<8x128xf32>
    %239 = arith.negf %238 : vector<8x128xf32>
    %240 = math.exp %239 : vector<8x128xf32>
    %cst_54 = arith.constant 1.000000e+00 : f32
    %241 = vector.broadcast %cst_54 : f32 to vector<8x128xf32>
    %242 = arith.addf %241, %240 : vector<8x128xf32>
    %243 = arith.divf %241, %242 : vector<8x128xf32>
    %244 = arith.mulf %235, %210 : vector<8x128xf32>
    %245 = arith.mulf %229, %237 : vector<8x128xf32>
    %246 = arith.addf %244, %245 : vector<8x128xf32>
    %247 = math.tanh %246 : vector<8x128xf32>
    %248 = arith.mulf %243, %247 : vector<8x128xf32>
    %249 = arith.truncf %248 : vector<8x128xf32> to vector<8x128xbf16>
    %250 = arith.index_cast %c6_i32 : i32 to index
    %c0_55 = arith.constant 0 : index
    %c0_56 = arith.constant 0 : index
    %251 = vector.load %arg3[%250, %c0_55, %c0_56] : memref<8x8x128xbf16, #tpu.memory_space<vmem>>, vector<1x8x128xbf16>
    %252 = vector.shape_cast %251 : vector<1x8x128xbf16> to vector<8x128xbf16>
    %253 = vector.shape_cast %249 : vector<8x128xbf16> to vector<1x8x128xbf16>
    tpu.vector_store %arg3[%250, %c0_55, %c0_56], %253 {strides = array<i32>} : memref<8x8x128xbf16, #tpu.memory_space<vmem>>, vector<1x8x128xbf16>,
    %c7_i32 = arith.constant 7 : i32
    %254 = arith.index_cast %c7_i32 : i32 to index
    %c0_57 = arith.constant 0 : index
    %c0_58 = arith.constant 0 : index
    %255 = vector.load %arg1[%254, %c0_57, %c0_58] : memref<8x8x512xf32, #tpu.memory_space<vmem>>, vector<1x8x512xf32>
    %256 = vector.shape_cast %255 : vector<1x8x512xf32> to vector<8x512xf32>
    %257 = arith.truncf %248 : vector<8x128xf32> to vector<8x128xbf16>
    %cst_59 = arith.constant dense<0.000000e+00> : vector<8x512xf32>
    %258 = tpu.matmul %257, %0, %cst_59 {dimension_numbers = #tpu.dot_dimension_numbers<[1], [0], [0], [1], [0, 0, 1, 1], [], []>} : vector<8x128xbf16>, vector<128x512xbf16>, vector<8x512xf32> -> vector<8x512xf32>
    %259 = arith.addf %256, %258 : vector<8x512xf32>
    %260 = vector.extract_strided_slice %259 {offsets = [0, 0], sizes = [8, 128], strides = [1, 1]} : vector<8x512xf32> to vector<8x128xf32>
    %261 = arith.negf %260 : vector<8x128xf32>
    %262 = math.exp %261 : vector<8x128xf32>
    %cst_60 = arith.constant 1.000000e+00 : f32
    %263 = vector.broadcast %cst_60 : f32 to vector<8x128xf32>
    %264 = arith.addf %263, %262 : vector<8x128xf32>
    %265 = arith.divf %263, %264 : vector<8x128xf32>
    %266 = vector.extract_strided_slice %259 {offsets = [0, 128], sizes = [8, 128], strides = [1, 1]} : vector<8x512xf32> to vector<8x128xf32>
    %267 = arith.negf %266 : vector<8x128xf32>
    %268 = math.exp %267 : vector<8x128xf32>
    %cst_61 = arith.constant 1.000000e+00 : f32
    %269 = vector.broadcast %cst_61 : f32 to vector<8x128xf32>
    %270 = arith.addf %269, %268 : vector<8x128xf32>
    %271 = arith.divf %269, %270 : vector<8x128xf32>
    %272 = vector.extract_strided_slice %259 {offsets = [0, 256], sizes = [8, 128], strides = [1, 1]} : vector<8x512xf32> to vector<8x128xf32>
    %273 = math.tanh %272 : vector<8x128xf32>
    %274 = vector.extract_strided_slice %259 {offsets = [0, 384], sizes = [8, 128], strides = [1, 1]} : vector<8x512xf32> to vector<8x128xf32>
    %275 = arith.negf %274 : vector<8x128xf32>
    %276 = math.exp %275 : vector<8x128xf32>
    %cst_62 = arith.constant 1.000000e+00 : f32
    %277 = vector.broadcast %cst_62 : f32 to vector<8x128xf32>
    %278 = arith.addf %277, %276 : vector<8x128xf32>
    %279 = arith.divf %277, %278 : vector<8x128xf32>
    %280 = arith.mulf %271, %246 : vector<8x128xf32>
    %281 = arith.mulf %265, %273 : vector<8x128xf32>
    %282 = arith.addf %280, %281 : vector<8x128xf32>
    %283 = math.tanh %282 : vector<8x128xf32>
    %284 = arith.mulf %279, %283 : vector<8x128xf32>
    %285 = arith.truncf %284 : vector<8x128xf32> to vector<8x128xbf16>
    %286 = arith.index_cast %c7_i32 : i32 to index
    %c0_63 = arith.constant 0 : index
    %c0_64 = arith.constant 0 : index
    %287 = vector.load %arg3[%286, %c0_63, %c0_64] : memref<8x8x128xbf16, #tpu.memory_space<vmem>>, vector<1x8x128xbf16>
    %288 = vector.shape_cast %287 : vector<1x8x128xbf16> to vector<8x128xbf16>
    %289 = vector.shape_cast %285 : vector<8x128xbf16> to vector<1x8x128xbf16>
    tpu.vector_store %arg3[%286, %c0_63, %c0_64], %289 {strides = array<i32>} : memref<8x8x128xbf16, #tpu.memory_space<vmem>>, vector<1x8x128xbf16>,
    %c8_i32 = arith.constant 8 : i32
    return
  }
  func.func @transform_0(%arg0: i32) -> (i32, i32, i32) {
    %c0_i32 = arith.constant 0 : i32
    %c0_i32_0 = arith.constant 0 : i32
    %c0_i32_1 = arith.constant 0 : i32
    return %c0_i32, %arg0, %c0_i32_0 : i32, i32, i32
  }
  func.func @transform_1(%arg0: i32) -> (i32, i32) {
    %c0_i32 = arith.constant 0 : i32
    %c0_i32_0 = arith.constant 0 : i32
    %c0_i32_1 = arith.constant 0 : i32
    return %c0_i32, %c0_i32_0 : i32, i32
  }
  func.func @transform_2(%arg0: i32) -> (i32, i32, i32) {
    %c0_i32 = arith.constant 0 : i32
    %c0_i32_0 = arith.constant 0 : i32
    %c0_i32_1 = arith.constant 0 : i32
    return %c0_i32, %arg0, %c0_i32_0 : i32, i32, i32
  }
}

</mosaic_0001>

<bundles_post_ra>
// kernel: decoder_rnn_forward.5
= control target key start
LH: loop header
LB: loop body
LE: loop exit
PB: predicated region body
PF: predicated region fallthrough
CT: control target
= control target key end

     0   :  { %v351_v2 = vmov 0   ;;  %s441_s0 = inlined_call_operand.vmem [shape: bf16[64,128], index: 0, kind: input, shape index: {}]   ;;  %s442_s1 = inlined_call_operand.vmem [shape: bf16[128,256], index: 1, kind: input, shape index: {}]   ;;  %s443_s2 = inlined_call_operand.vmem [shape: f32[1,256], index: 2, kind: input, shape index: {}]   ;;  %s444_s3 = inlined_call_operand.hbm [shape: f32[64,256], index: 3, kind: output, shape index: {}]  }
   0x1   :  { %v301_v0 = vld [vmem:[%s442_s1 + $0x74] ss:$8 sps:$4 sm:$0xff]   ;;  %v303_v1 = vld [vmem:[%s442_s1 + $0x70] ss:$8 sps:$4 sm:$0xff]   ;;  %188 = vmatprep.mubr.bf16.mxu0 %v351_v2  ;;  %208 = vmatprep.mubr.bf16.mxu1 %v351_v2  ;;  %v304_v3 = vld [vmem:[%s442_s1 + $0x64] ss:$8 sps:$4 sm:$0xff]  }
   0x2   :  { %156 = vmatprep.subr.bf16.mxu0 %v301_v0  ;;  %281 = vmatprep.subr.bf16.mxu1 %v301_v0  ;;  %v306_v4 = vld [vmem:[%s442_s1 + $0x60] ss:$8 sps:$4 sm:$0xff]   ;;  %v307_v5 = vld [vmem:[%s442_s1 + $0x54] ss:$8 sps:$4 sm:$0xff]   ;;  %v309_v6 = vld [vmem:[%s442_s1 + $0x50] ss:$8 sps:$4 sm:$0xff]  }
   0x3   :  { %157 = vmatpush1.bf16.msra.mxu0 %v303_v1  ;;  %289 = vmatpush1.bf16.msra.mxu1 %v303_v1  ;;  %v310_v7 = vld [vmem:[%s442_s1 + $0x44] ss:$8 sps:$4 sm:$0xff]   ;;  %v312_v8 = vld [vmem:[%s442_s1 + $0x40] ss:$8 sps:$4 sm:$0xff]   ;;  %v313_v9 = vld [vmem:[%s442_s1 + $0x34] ss:$8 sps:$4 sm:$0xff]  }
   0x4   :  { %158 = vmatprep.subr.bf16.mxu0 %v304_v3  ;;  %282 = vmatprep.subr.bf16.mxu1 %v304_v3  ;;  %v315_v10 = vld [vmem:[%s442_s1 + $0x30] ss:$8 sps:$4 sm:$0xff]  }
   0x7   :  { %159 = vmatpush1.bf16.msra.mxu0 %v306_v4  ;;  %290 = vmatpush1.bf16.msra.mxu1 %v306_v4 }
   0x8   :  { %160 = vmatprep.subr.bf16.mxu0 %v307_v5  ;;  %283 = vmatprep.subr.bf16.mxu1 %v307_v5 }
   0xb   :  { %161 = vmatpush1.bf16.msra.mxu0 %v309_v6  ;;  %291 = vmatpush1.bf16.msra.mxu1 %v309_v6 }
   0xc   :  { %162 = vmatprep.subr.bf16.mxu0 %v310_v7  ;;  %284 = vmatprep.subr.bf16.mxu1 %v310_v7 }
   0xf   :  { %163 = vmatpush1.bf16.msra.mxu0 %v312_v8  ;;  %292 = vmatpush1.bf16.msra.mxu1 %v312_v8 }
  0x10   :  { %8 = vsyncpa [#allocation3], 0  ;;  %164 = vmatprep.subr.bf16.mxu0 %v313_v9  ;;  %285 = vmatprep.subr.bf16.mxu1 %v313_v9  ;;  %v316_v11 = vld [vmem:[%s442_s1 + $0x24] ss:$8 sps:$4 sm:$0xff]   ;;  %v318_v12 = vld [vmem:[%s442_s1 + $0x20] ss:$8 sps:$4 sm:$0xff]   ;;  %v42_v21 = vlaneseq }
  0x11   :  { %v319_v13 = vld [vmem:[%s442_s1 + $0x14] ss:$8 sps:$4 sm:$0xff]   ;;  %v321_v14 = vld [vmem:[%s442_s1 + $0x10] ss:$8 sps:$4 sm:$0xff]   ;;  %v322_v15 = vld [vmem:[%s442_s1 + $0x4] ss:$8 sps:$4 sm:$0xff]  }
  0x12   :  { %v324_v16 = vld [vmem:[%s442_s1] ss:$8 sps:$4 sm:$0xff]   ;;  %v326_v18 = vld [vmem:[%s441_s0 + $0x10] sm:$0xff]   ;;  %v328_v20 = vld [vmem:[%s441_s0 + $0x18] sm:$0xff]   ;;  %v43_v22 = vshrl.u32 %v42_v21, 7 }
  0x13   :  { %165 = vmatpush1.bf16.msra.mxu0 %v315_v10  ;;  %293 = vmatpush1.bf16.msra.mxu1 %v315_v10  ;;  %v325_v17 = vld [vmem:[%s441_s0] sm:$0xff]   ;;  %v327_v19 = vld [vmem:[%s441_s0 + $0x8] sm:$0xff]   ;;  %s352_s0 = smov [#allocation2]  }
  0x14   :  { %166 = vmatprep.subr.bf16.mxu0 %v316_v11  ;;  %286 = vmatprep.subr.bf16.mxu1 %v316_v11  ;;  %v44_v23 = vsub.s32 0, %v43_v22  ;;  %v40_v24 = vld [vmem:[%s443_s2] sm:$0x3]  ;;  %v48_v25 = vsub.s32 1, %v43_v22  ;;  %s250_s2 = sshll.u32 %s352_s0, 4  ;;  %s251_s2 = int_to_ptr.vmem [resolvable:$true] %s250_s2 }
  0x15   :  { %s329_s26 = scalar_lea.vmem %s251_s2, 2048  ;;  %p334_p1 = scmp.lt.s32.totalorder %s251_s2, %s251_s2 }
  0x16   :  { %v45_v26 = vrot.slane %v40_v24, %v44_v23  ;;  %v49_v27 = vrot.slane %v40_v24, %v48_v25  ;;  %p330_p0 = scmp.ne.s32.totalorder %s251_s2, %s329_s26  ;;  %p335_p2 = scmp.lt.s32.totalorder %s329_s26, %s329_s26 }
  0x17   :  { %167 = vmatpush1.bf16.msra.mxu0 %v318_v12  ;;  %294 = vmatpush1.bf16.msra.mxu1 %v318_v12 }
  0x18   :  { %168 = vmatprep.subr.bf16.mxu0 %v319_v13  ;;  %287 = vmatprep.subr.bf16.mxu1 %v319_v13  ;;  %p336_p3 = por %p335_p2, %p334_p1 }
  0x1a   :  { %p337_p4 = pnand %p336_p3, %p330_p0 }
  0x1b   :  { %169 = vmatpush1.bf16.msra.mxu0 %v321_v14  ;;  %295 = vmatpush1.bf16.msra.mxu1 %v321_v14 }
  0x1c   :  { %170 = vmatprep.subr.bf16.mxu0 %v322_v15  ;;  %288 = vmatprep.subr.bf16.mxu1 %v322_v15 }
  0x1f   :  { %171 = vmatpush1.bf16.msra.mxu0 %v324_v16  ;;  %296 = vmatpush1.bf16.msra.mxu1 %v324_v16 }
  0x22   :  { %189 = vmatmul.mubr.bf16.vlgmr.msra.gmra.mxu0 %v325_v17  ;;  %209 = vmatmul.mubr.bf16.vlgmr.msra.gmra.mxu1 %v326_v18 }
  0x23   :  { %198 = vmatprep.mubr.bf16.mxu0 %v351_v2  ;;  %218 = vmatprep.mubr.bf16.mxu1 %v351_v2 }
  0x2a   :  { %199 = vmatmul.mubr.bf16.gmra.mxu0 %v327_v19  ;;  %219 = vmatmul.mubr.bf16.gmra.mxu1 %v328_v20 }
  0xe2   :  { %v190_v28 = vpop.f32.mrf.mxu0  ;;  %v210_v29 = vpop.f32.mrf.mxu1 }
  0xe3   :  { %v191_v30 = vadd.f32 %v190_v28, %v45_v26  ;;  %v211_v31 = vadd.f32 %v210_v29, %v45_v26 }
  0xe4   :  { %v192_v32 = vpop.f32.mrf.mxu0  ;;  %v212_v33 = vpop.f32.mrf.mxu1 }
  0xe5   :  { %229 = vst [vmem:[#allocation2] sm:$0xff] %v191_v30  ;;  %237 = vst [vmem:[#allocation2 + $0x40] sm:$0xff] %v211_v31  ;;  %v193_v34 = vadd.f32 %v192_v32, %v49_v27  ;;  %v213_v35 = vadd.f32 %v212_v33, %v49_v27 }
  0xe6   :  { %v194_v36 = vpop.f32.mrf.mxu0  ;;  %v214_v37 = vpop.f32.mrf.mxu1 }
  0xe7   :  { %230 = vst [vmem:[#allocation2 + $0x8] sm:$0xff] %v193_v34  ;;  %238 = vst [vmem:[#allocation2 + $0x48] sm:$0xff] %v213_v35  ;;  %v195_v38 = vadd.f32 %v194_v36, %v45_v26  ;;  %v215_v39 = vadd.f32 %v214_v37, %v45_v26 }
  0xe8   :  { %v196_v40 = vpop.f32.mrf.mxu0  ;;  %v216_v41 = vpop.f32.mrf.mxu1 }
  0xe9   :  { %231 = vst [vmem:[#allocation2 + $0x10] sm:$0xff] %v195_v38  ;;  %239 = vst [vmem:[#allocation2 + $0x50] sm:$0xff] %v215_v39  ;;  %v197_v42 = vadd.f32 %v196_v40, %v49_v27  ;;  %v217_v43 = vadd.f32 %v216_v41, %v49_v27 }
  0xea   :  { %v200_v44 = vpop.f32.mrf.mxu0  ;;  %v220_v45 = vpop.f32.mrf.mxu1 }
  0xeb   :  { %232 = vst [vmem:[#allocation2 + $0x18] sm:$0xff] %v197_v42  ;;  %240 = vst [vmem:[#allocation2 + $0x58] sm:$0xff] %v217_v43  ;;  %v201_v46 = vadd.f32 %v200_v44, %v45_v26  ;;  %v221_v47 = vadd.f32 %v220_v45, %v45_v26 }
  0xec   :  { %v202_v48 = vpop.f32.mrf.mxu0  ;;  %v222_v49 = vpop.f32.mrf.mxu1 }
  0xed   :  { %233 = vst [vmem:[#allocation2 + $0x20] sm:$0xff] %v201_v46  ;;  %241 = vst [vmem:[#allocation2 + $0x60] sm:$0xff] %v221_v47  ;;  %v203_v50 = vadd.f32 %v202_v48, %v49_v27  ;;  %v223_v51 = vadd.f32 %v222_v49, %v49_v27 }
  0xee   :  { %v204_v52 = vpop.f32.mrf.mxu0  ;;  %v224_v53 = vpop.f32.mrf.mxu1 }
  0xef   :  { %234 = vst [vmem:[#allocation2 + $0x28] sm:$0xff] %v203_v50  ;;  %242 = vst [vmem:[#allocation2 + $0x68] sm:$0xff] %v223_v51  ;;  %v205_v54 = vadd.f32 %v204_v52, %v45_v26  ;;  %v225_v55 = vadd.f32 %v224_v53, %v45_v26 }
  0xf0   :  { %v206_v56 = vpop.f32.mrf.mxu0  ;;  %v226_v57 = vpop.f32.mrf.mxu1 }
  0xf1   :  { %235 = vst [vmem:[#allocation2 + $0x30] sm:$0xff] %v205_v54  ;;  %243 = vst [vmem:[#allocation2 + $0x70] sm:$0xff] %v225_v55  ;;  %v207_v58 = vadd.f32 %v206_v56, %v49_v27  ;;  %v227_v59 = vadd.f32 %v226_v57, %v49_v27 }
  0xf3   :  { %236 = vst [vmem:[#allocation2 + $0x38] sm:$0xff] %v207_v58  ;;  %244 = vst [vmem:[#allocation2 + $0x78] sm:$0xff] %v227_v59 }
  0xf4   :  { %340 = shalt.err (!%p337_p4)
}
  0xf5   :  { %s353_s27 = smov 256   ;;  %s354_s28 = smov 16  }
  0xf6   :  { %256 = dma.vmem_to_hbm [thread:$0]  %s251_s2, 2048, %s444_s3, [#allocation3], %s353_s27, %s353_s27, %s354_s28  }
  0xf7   :  { %349 = dma.done.wait [#allocation3], 2048  }
  0xf8   :  { %350 = vsyncadd [#allocation3], 4294965248 }
  0xf9   :  { %260 = vsyncpa [#allocation3], 1 }

// kernel: decoder_rnn_forward.3
= control target key start
LH: loop header
LB: loop body
LE: loop exit
PB: predicated region body
PF: predicated region fallthrough
CT: control target
= control target key end

     0   :  { %v532_v1 = vmov 0   ;;  %v57_v37 = vlaneseq  ;;  %s808_s1 = inlined_call_operand.vmem [shape: bf16[128,512], index: 1, kind: input, shape index: {}]   ;;  %s809_s0 = inlined_call_operand.vmem [shape: bf16[64,128], index: 0, kind: input, shape index: {}]   ;;  %s810_s2 = inlined_call_operand.vmem [shape: f32[1,512], index: 2, kind: input, shape index: {}]   ;;  %s811_s3 = inlined_call_operand.vmem [shape: f32[64,512], index: 3, kind: output, shape index: {}]  }
   0x1   :  { %v480_v0 = vld [vmem:[%s808_s1 + $0xe4] ss:$16 sps:$4 sm:$0xff]   ;;  %293 = vmatprep.mubr.bf16.mxu0 %v532_v1  ;;  %366 = vmatprep.mubr.bf16.mxu1 %v532_v1  ;;  %v482_v2 = vld [vmem:[%s808_s1 + $0xec] ss:$16 sps:$4 sm:$0xff]   ;;  %v484_v3 = vld [vmem:[%s808_s1 + $0xe0] ss:$16 sps:$4 sm:$0xff]  }
   0x2   :  { %261 = vmatprep.subr.bf16.mxu0 %v480_v0  ;;  %v485_v4 = vld [vmem:[%s808_s1 + $0xe8] ss:$16 sps:$4 sm:$0xff]   ;;  %334 = vmatprep.subr.bf16.mxu1 %v482_v2  ;;  %v486_v5 = vld [vmem:[%s808_s1 + $0xc4] ss:$16 sps:$4 sm:$0xff]   ;;  %v488_v6 = vld [vmem:[%s808_s1 + $0xcc] ss:$16 sps:$4 sm:$0xff]  }
   0x3   :  { %262 = vmatpush1.bf16.msra.mxu0 %v484_v3  ;;  %335 = vmatpush1.bf16.msra.mxu1 %v485_v4  ;;  %v490_v7 = vld [vmem:[%s808_s1 + $0xc0] ss:$16 sps:$4 sm:$0xff]   ;;  %v491_v8 = vld [vmem:[%s808_s1 + $0xc8] ss:$16 sps:$4 sm:$0xff]   ;;  %v492_v9 = vld [vmem:[%s808_s1 + $0xa4] ss:$16 sps:$4 sm:$0xff]  }
   0x4   :  { %263 = vmatprep.subr.bf16.mxu0 %v486_v5  ;;  %336 = vmatprep.subr.bf16.mxu1 %v488_v6  ;;  %v494_v10 = vld [vmem:[%s808_s1 + $0xac] ss:$16 sps:$4 sm:$0xff]   ;;  %v496_v11 = vld [vmem:[%s808_s1 + $0xa0] ss:$16 sps:$4 sm:$0xff]   ;;  %v497_v12 = vld [vmem:[%s808_s1 + $0xa8] ss:$16 sps:$4 sm:$0xff]  }
   0x5   :  { %v498_v13 = vld [vmem:[%s808_s1 + $0x84] ss:$16 sps:$4 sm:$0xff]   ;;  %v500_v14 = vld [vmem:[%s808_s1 + $0x8c] ss:$16 sps:$4 sm:$0xff]   ;;  %v502_v15 = vld [vmem:[%s808_s1 + $0x80] ss:$16 sps:$4 sm:$0xff]  }
   0x6   :  { %v503_v16 = vld [vmem:[%s808_s1 + $0x88] ss:$16 sps:$4 sm:$0xff]   ;;  %v504_v17 = vld [vmem:[%s808_s1 + $0x64] ss:$16 sps:$4 sm:$0xff]   ;;  %v506_v18 = vld [vmem:[%s808_s1 + $0x6c] ss:$16 sps:$4 sm:$0xff]  }
   0x7   :  { %264 = vmatpush1.bf16.msra.mxu0 %v490_v7  ;;  %337 = vmatpush1.bf16.msra.mxu1 %v491_v8  ;;  %v508_v19 = vld [vmem:[%s808_s1 + $0x60] ss:$16 sps:$4 sm:$0xff]   ;;  %v509_v20 = vld [vmem:[%s808_s1 + $0x68] ss:$16 sps:$4 sm:$0xff]   ;;  %v510_v21 = vld [vmem:[%s808_s1 + $0x44] ss:$16 sps:$4 sm:$0xff]  }
   0x8   :  { %265 = vmatprep.subr.bf16.mxu0 %v492_v9  ;;  %338 = vmatprep.subr.bf16.mxu1 %v494_v10  ;;  %v512_v22 = vld [vmem:[%s808_s1 + $0x4c] ss:$16 sps:$4 sm:$0xff]   ;;  %v514_v23 = vld [vmem:[%s808_s1 + $0x40] ss:$16 sps:$4 sm:$0xff]   ;;  %v515_v24 = vld [vmem:[%s808_s1 + $0x48] ss:$16 sps:$4 sm:$0xff]  }
   0x9   :  { %v516_v25 = vld [vmem:[%s808_s1 + $0x24] ss:$16 sps:$4 sm:$0xff]   ;;  %v518_v26 = vld [vmem:[%s808_s1 + $0x2c] ss:$16 sps:$4 sm:$0xff]   ;;  %v520_v27 = vld [vmem:[%s808_s1 + $0x20] ss:$16 sps:$4 sm:$0xff]  }
   0xa   :  { %v521_v28 = vld [vmem:[%s808_s1 + $0x28] ss:$16 sps:$4 sm:$0xff]   ;;  %v522_v29 = vld [vmem:[%s808_s1 + $0x4] ss:$16 sps:$4 sm:$0xff]   ;;  %v524_v30 = vld [vmem:[%s808_s1 + $0xc] ss:$16 sps:$4 sm:$0xff]  }
   0xb   :  { %266 = vmatpush1.bf16.msra.mxu0 %v496_v11  ;;  %339 = vmatpush1.bf16.msra.mxu1 %v497_v12  ;;  %v526_v31 = vld [vmem:[%s808_s1] ss:$16 sps:$4 sm:$0xff]   ;;  %v527_v32 = vld [vmem:[%s808_s1 + $0x8] ss:$16 sps:$4 sm:$0xff]   ;;  %v58_v38 = vshrl.u32 %v57_v37, 7 }
   0xc   :  { %267 = vmatprep.subr.bf16.mxu0 %v498_v13  ;;  %340 = vmatprep.subr.bf16.mxu1 %v500_v14  ;;  %v528_v33 = vld [vmem:[%s809_s0] sm:$0xff]   ;;  %v529_v34 = vld [vmem:[%s809_s0 + $0x8] sm:$0xff]   ;;  %v530_v35 = vld [vmem:[%s809_s0 + $0x10] sm:$0xff]  }
   0xd   :  { %v531_v36 = vld [vmem:[%s809_s0 + $0x18] sm:$0xff]   ;;  %v59_v39 = vsub.s32 0, %v58_v38  ;;  %v67_v40 = vsub.s32 2, %v58_v38  ;;  %v55_v41 = vld [vmem:[%s810_s2] sm:$0xf]  ;;  %v63_v42 = vsub.s32 1, %v58_v38 }
   0xe   :  { %v71_v43 = vsub.s32 3, %v58_v38 }
   0xf   :  { %268 = vmatpush1.bf16.msra.mxu0 %v502_v15  ;;  %341 = vmatpush1.bf16.msra.mxu1 %v503_v16  ;;  %v672_v44 = vrot.slane %v55_v41, %v59_v39  ;;  %v674_v45 = vrot.slane %v55_v41, %v67_v40  ;;  %v676_v46 = vrot.slane %v55_v41, %v63_v42 }
  0x10   :  { %269 = vmatprep.subr.bf16.mxu0 %v504_v17  ;;  %342 = vmatprep.subr.bf16.mxu1 %v506_v18  ;;  %v678_v47 = vrot.slane %v55_v41, %v71_v43 }
  0x13   :  { %270 = vmatpush1.bf16.msra.mxu0 %v508_v19  ;;  %343 = vmatpush1.bf16.msra.mxu1 %v509_v20 }
  0x14   :  { %271 = vmatprep.subr.bf16.mxu0 %v510_v21  ;;  %344 = vmatprep.subr.bf16.mxu1 %v512_v22 }
  0x17   :  { %272 = vmatpush1.bf16.msra.mxu0 %v514_v23  ;;  %345 = vmatpush1.bf16.msra.mxu1 %v515_v24 }
  0x18   :  { %273 = vmatprep.subr.bf16.mxu0 %v516_v25  ;;  %346 = vmatprep.subr.bf16.mxu1 %v518_v26 }
  0x1b   :  { %274 = vmatpush1.bf16.msra.mxu0 %v520_v27  ;;  %347 = vmatpush1.bf16.msra.mxu1 %v521_v28 }
  0x1c   :  { %275 = vmatprep.subr.bf16.mxu0 %v522_v29  ;;  %348 = vmatprep.subr.bf16.mxu1 %v524_v30 }
  0x1f   :  { %276 = vmatpush1.bf16.msra.mxu0 %v526_v31  ;;  %349 = vmatpush1.bf16.msra.mxu1 %v527_v32 }
  0x22   :  { %294 = vmatmul.mubr.bf16.vlgmr.msra.gmra.mxu0 %v528_v33  ;;  %367 = vmatmul.mubr.bf16.vlgmr.msra.gmra.mxu1 %v528_v33 }
  0x23   :  { %303 = vmatprep.mubr.bf16.mxu0 %v532_v1  ;;  %376 = vmatprep.mubr.bf16.mxu1 %v532_v1 }
  0x2a   :  { %304 = vmatmul.mubr.bf16.gmra.mxu0 %v529_v34  ;;  %377 = vmatmul.mubr.bf16.gmra.mxu1 %v529_v34 }
  0x2b   :  { %313 = vmatprep.mubr.bf16.mxu0 %v532_v1  ;;  %386 = vmatprep.mubr.bf16.mxu1 %v532_v1 }
  0x32   :  { %314 = vmatmul.mubr.bf16.gmra.mxu0 %v530_v35  ;;  %387 = vmatmul.mubr.bf16.gmra.mxu1 %v530_v35 }
  0x33   :  { %323 = vmatprep.mubr.bf16.mxu0 %v532_v1  ;;  %396 = vmatprep.mubr.bf16.mxu1 %v532_v1 }
  0x3a   :  { %324 = vmatmul.mubr.bf16.gmra.mxu0 %v531_v36  ;;  %397 = vmatmul.mubr.bf16.gmra.mxu1 %v531_v36 }
  0xe2   :  { %v295_v48 = vpop.f32.mrf.mxu0  ;;  %v368_v49 = vpop.f32.mrf.mxu1 }
  0xe3   :  { %v296_v50 = vadd.f32 %v295_v48, %v672_v44  ;;  %v369_v51 = vadd.f32 %v368_v49, %v674_v45 }
  0xe4   :  { %v297_v52 = vpop.f32.mrf.mxu0  ;;  %v370_v53 = vpop.f32.mrf.mxu1 }
  0xe5   :  { %407 = vst [vmem:[%s811_s3] sm:$0xff] %v296_v50  ;;  %409 = vst [vmem:[%s811_s3 + $0x10] sm:$0xff] %v369_v51  ;;  %v298_v54 = vadd.f32 %v297_v52, %v676_v46  ;;  %v371_v55 = vadd.f32 %v370_v53, %v678_v47 }
  0xe6   :  { %v299_v56 = vpop.f32.mrf.mxu0  ;;  %v372_v57 = vpop.f32.mrf.mxu1 }
  0xe7   :  { %408 = vst [vmem:[%s811_s3 + $0x8] sm:$0xff] %v298_v54  ;;  %410 = vst [vmem:[%s811_s3 + $0x18] sm:$0xff] %v371_v55  ;;  %v300_v58 = vadd.f32 %v299_v56, %v672_v44  ;;  %v373_v59 = vadd.f32 %v372_v57, %v674_v45 }
  0xe8   :  { %v301_v60 = vpop.f32.mrf.mxu0  ;;  %v374_v61 = vpop.f32.mrf.mxu1 }
  0xe9   :  { %411 = vst [vmem:[%s811_s3 + $0x20] sm:$0xff] %v300_v58  ;;  %413 = vst [vmem:[%s811_s3 + $0x30] sm:$0xff] %v373_v59  ;;  %v302_v62 = vadd.f32 %v301_v60, %v676_v46  ;;  %v375_v63 = vadd.f32 %v374_v61, %v678_v47 }
  0xea   :  { %v305_v0 = vpop.f32.mrf.mxu0  ;;  %v378_v1 = vpop.f32.mrf.mxu1 }
  0xeb   :  { %412 = vst [vmem:[%s811_s3 + $0x28] sm:$0xff] %v302_v62  ;;  %414 = vst [vmem:[%s811_s3 + $0x38] sm:$0xff] %v375_v63  ;;  %v306_v2 = vadd.f32 %v305_v0, %v672_v44  ;;  %v379_v3 = vadd.f32 %v378_v1, %v674_v45 }
  0xec   :  { %v307_v4 = vpop.f32.mrf.mxu0  ;;  %v380_v5 = vpop.f32.mrf.mxu1 }
  0xed   :  { %415 = vst [vmem:[%s811_s3 + $0x40] sm:$0xff] %v306_v2  ;;  %417 = vst [vmem:[%s811_s3 + $0x50] sm:$0xff] %v379_v3  ;;  %v308_v6 = vadd.f32 %v307_v4, %v676_v46  ;;  %v381_v7 = vadd.f32 %v380_v5, %v678_v47 }
  0xee   :  { %v309_v8 = vpop.f32.mrf.mxu0  ;;  %v382_v9 = vpop.f32.mrf.mxu1 }
  0xef   :  { %416 = vst [vmem:[%s811_s3 + $0x48] sm:$0xff] %v308_v6  ;;  %418 = vst [vmem:[%s811_s3 + $0x58] sm:$0xff] %v381_v7  ;;  %v310_v10 = vadd.f32 %v309_v8, %v672_v44  ;;  %v383_v11 = vadd.f32 %v382_v9, %v674_v45 }
  0xf0   :  { %v311_v12 = vpop.f32.mrf.mxu0  ;;  %v384_v13 = vpop.f32.mrf.mxu1 }
  0xf1   :  { %419 = vst [vmem:[%s811_s3 + $0x60] sm:$0xff] %v310_v10  ;;  %421 = vst [vmem:[%s811_s3 + $0x70] sm:$0xff] %v383_v11  ;;  %v312_v14 = vadd.f32 %v311_v12, %v676_v46  ;;  %v385_v15 = vadd.f32 %v384_v13, %v678_v47 }
  0xf2   :  { %v315_v16 = vpop.f32.mrf.mxu0  ;;  %v388_v17 = vpop.f32.mrf.mxu1 }
  0xf3   :  { %420 = vst [vmem:[%s811_s3 + $0x68] sm:$0xff] %v312_v14  ;;  %422 = vst [vmem:[%s811_s3 + $0x78] sm:$0xff] %v385_v15  ;;  %v316_v18 = vadd.f32 %v315_v16, %v672_v44  ;;  %v389_v19 = vadd.f32 %v388_v17, %v674_v45 }
  0xf4   :  { %v317_v20 = vpop.f32.mrf.mxu0  ;;  %v390_v21 = vpop.f32.mrf.mxu1 }
  0xf5   :  { %423 = vst [vmem:[%s811_s3 + $0x80] sm:$0xff] %v316_v18  ;;  %425 = vst [vmem:[%s811_s3 + $0x90] sm:$0xff] %v389_v19  ;;  %v318_v22 = vadd.f32 %v317_v20, %v676_v46  ;;  %v391_v23 = vadd.f32 %v390_v21, %v678_v47 }
  0xf6   :  { %v319_v24 = vpop.f32.mrf.mxu0  ;;  %v392_v25 = vpop.f32.mrf.mxu1 }
  0xf7   :  { %424 = vst [vmem:[%s811_s3 + $0x88] sm:$0xff] %v318_v22  ;;  %426 = vst [vmem:[%s811_s3 + $0x98] sm:$0xff] %v391_v23  ;;  %v320_v26 = vadd.f32 %v319_v24, %v672_v44  ;;  %v393_v27 = vadd.f32 %v392_v25, %v674_v45 }
  0xf8   :  { %v321_v28 = vpop.f32.mrf.mxu0  ;;  %v394_v29 = vpop.f32.mrf.mxu1 }
  0xf9   :  { %427 = vst [vmem:[%s811_s3 + $0xa0] sm:$0xff] %v320_v26  ;;  %429 = vst [vmem:[%s811_s3 + $0xb0] sm:$0xff] %v393_v27  ;;  %v322_v30 = vadd.f32 %v321_v28, %v676_v46  ;;  %v395_v31 = vadd.f32 %v394_v29, %v678_v47 }
  0xfa   :  { %v325_v32 = vpop.f32.mrf.mxu0  ;;  %v398_v33 = vpop.f32.mrf.mxu1 }
  0xfb   :  { %428 = vst [vmem:[%s811_s3 + $0xa8] sm:$0xff] %v322_v30  ;;  %430 = vst [vmem:[%s811_s3 + $0xb8] sm:$0xff] %v395_v31  ;;  %v326_v34 = vadd.f32 %v325_v32, %v672_v44  ;;  %v399_v35 = vadd.f32 %v398_v33, %v674_v45 }
  0xfc   :  { %v327_v36 = vpop.f32.mrf.mxu0  ;;  %v400_v37 = vpop.f32.mrf.mxu1 }
  0xfd   :  { %431 = vst [vmem:[%s811_s3 + $0xc0] sm:$0xff] %v326_v34  ;;  %433 = vst [vmem:[%s811_s3 + $0xd0] sm:$0xff] %v399_v35  ;;  %v328_v38 = vadd.f32 %v327_v36, %v676_v46  ;;  %v401_v39 = vadd.f32 %v400_v37, %v678_v47 }
  0xfe   :  { %v329_v40 = vpop.f32.mrf.mxu0  ;;  %v402_v41 = vpop.f32.mrf.mxu1 }
  0xff   :  { %432 = vst [vmem:[%s811_s3 + $0xc8] sm:$0xff] %v328_v38  ;;  %434 = vst [vmem:[%s811_s3 + $0xd8] sm:$0xff] %v401_v39  ;;  %v330_v42 = vadd.f32 %v329_v40, %v672_v44  ;;  %v403_v43 = vadd.f32 %v402_v41, %v674_v45 }
 0x100   :  { %v331_v48 = vpop.f32.mrf.mxu0  ;;  %v404_v49 = vpop.f32.mrf.mxu1 }
 0x101   :  { %435 = vst [vmem:[%s811_s3 + $0xe0] sm:$0xff] %v330_v42  ;;  %437 = vst [vmem:[%s811_s3 + $0xf0] sm:$0xff] %v403_v43  ;;  %v332_v50 = vadd.f32 %v331_v48, %v676_v46  ;;  %v405_v51 = vadd.f32 %v404_v49, %v678_v47 }
 0x103   :  { %436 = vst [vmem:[%s811_s3 + $0xe8] sm:$0xff] %v332_v50  ;;  %438 = vst [vmem:[%s811_s3 + $0xf8] sm:$0xff] %v405_v51 }

// kernel: decoder_rnn_forward.4
= control target key start
LH: loop header
LB: loop body
LE: loop exit
PB: predicated region body
PF: predicated region fallthrough
CT: control target
= control target key end

     0   :  { %v1450_v1 = vmov 0   ;;  %s2108_s1 = inlined_call_operand.vmem [shape: bf16[128,512], index: 1, kind: input, shape index: {}]   ;;  %s2109_s0 = inlined_call_operand.vmem [shape: f32[8,8,512], index: 0, kind: input, shape index: {}]   ;;  %s2110_s2 = inlined_call_operand.vmem [shape: bf16[8,8,128], index: 2, kind: output, shape index: {}]  }
   0x1   :  { %v1469_v0 = vld [vmem:[%s2108_s1 + $0xe4] ss:$16 sps:$4 sm:$0xff]   ;;  %240 = vmatprep.mubr.bf16.mxu0 %v1450_v1  ;;  %281 = vmatprep.mubr.bf16.mxu1 %v1450_v1  ;;  %v1476_v2 = vld [vmem:[%s2108_s1 + $0xe0] ss:$16 sps:$4 sm:$0xff]   ;;  %v1499_v6 = vld [vmem:[%s2108_s1 + $0xec] ss:$16 sps:$4 sm:$0xff]  }
   0x2   :  { %208 = vmatprep.subr.bf16.mxu0 %v1469_v0  ;;  %v1482_v3 = vld [vmem:[%s2108_s1 + $0xc4] ss:$16 sps:$4 sm:$0xff]   ;;  %v1488_v4 = vld [vmem:[%s2108_s1 + $0xc0] ss:$16 sps:$4 sm:$0xff]   ;;  %v1504_v7 = vld [vmem:[%s2108_s1 + $0xe8] ss:$16 sps:$4 sm:$0xff]   ;;  %249 = vmatprep.subr.bf16.mxu1 %v1499_v6 }
   0x3   :  { %209 = vmatpush1.bf16.msra.mxu0 %v1476_v2  ;;  %v1494_v5 = vld [vmem:[%s2108_s1 + $0xa4] ss:$16 sps:$4 sm:$0xff]   ;;  %v1510_v8 = vld [vmem:[%s2108_s1 + $0xa0] ss:$16 sps:$4 sm:$0xff]   ;;  %250 = vmatpush1.bf16.msra.mxu1 %v1504_v7  ;;  %v1523_v10 = vld [vmem:[%s2108_s1 + $0xcc] ss:$16 sps:$4 sm:$0xff]  }
   0x4   :  { %210 = vmatprep.subr.bf16.mxu0 %v1482_v3  ;;  %v1517_v9 = vld [vmem:[%s2108_s1 + $0x84] ss:$16 sps:$4 sm:$0xff]   ;;  %v1528_v11 = vld [vmem:[%s2108_s1 + $0xc8] ss:$16 sps:$4 sm:$0xff]   ;;  %251 = vmatprep.subr.bf16.mxu1 %v1523_v10  ;;  %v1535_v12 = vld [vmem:[%s2108_s1 + $0x80] ss:$16 sps:$4 sm:$0xff]  }
   0x5   :  { %v1540_v13 = vld [vmem:[%s2108_s1 + $0x64] ss:$16 sps:$4 sm:$0xff]   ;;  %v1545_v14 = vld [vmem:[%s2108_s1 + $0xac] ss:$16 sps:$4 sm:$0xff]   ;;  %v1552_v15 = vld [vmem:[%s2108_s1 + $0xa8] ss:$16 sps:$4 sm:$0xff]  }
   0x6   :  { %v1558_v16 = vld [vmem:[%s2108_s1 + $0x8c] ss:$16 sps:$4 sm:$0xff]   ;;  %v1564_v17 = vld [vmem:[%s2108_s1 + $0x60] ss:$16 sps:$4 sm:$0xff]   ;;  %v1570_v18 = vld [vmem:[%s2108_s1 + $0x44] ss:$16 sps:$4 sm:$0xff]  }
   0x7   :  { %211 = vmatpush1.bf16.msra.mxu0 %v1488_v4  ;;  %252 = vmatpush1.bf16.msra.mxu1 %v1528_v11  ;;  %v1576_v19 = vld [vmem:[%s2108_s1 + $0x88] ss:$16 sps:$4 sm:$0xff]   ;;  %v1582_v20 = vld [vmem:[%s2108_s1 + $0x6c] ss:$16 sps:$4 sm:$0xff]   ;;  %v1588_v21 = vld [vmem:[%s2108_s1 + $0x40] ss:$16 sps:$4 sm:$0xff]  }
   0x8   :  { %212 = vmatprep.subr.bf16.mxu0 %v1494_v5  ;;  %253 = vmatprep.subr.bf16.mxu1 %v1545_v14  ;;  %v1593_v22 = vld [vmem:[%s2108_s1 + $0x24] ss:$16 sps:$4 sm:$0xff]   ;;  %v1600_v23 = vld [vmem:[%s2108_s1 + $0x68] ss:$16 sps:$4 sm:$0xff]   ;;  %v1606_v24 = vld [vmem:[%s2108_s1 + $0x4c] ss:$16 sps:$4 sm:$0xff]  }
   0x9   :  { %v1612_v25 = vld [vmem:[%s2108_s1 + $0x20] ss:$16 sps:$4 sm:$0xff]   ;;  %v1618_v26 = vld [vmem:[%s2108_s1 + $0x4] ss:$16 sps:$4 sm:$0xff]   ;;  %v1624_v27 = vld [vmem:[%s2108_s1 + $0x48] ss:$16 sps:$4 sm:$0xff]  }
   0xa   :  { %v1630_v28 = vld [vmem:[%s2108_s1 + $0x2c] ss:$16 sps:$4 sm:$0xff]   ;;  %v1636_v29 = vld [vmem:[%s2108_s1] ss:$16 sps:$4 sm:$0xff]   ;;  %v1643_v30 = vld [vmem:[%s2108_s1 + $0x28] ss:$16 sps:$4 sm:$0xff]  }
   0xb   :  { %213 = vmatpush1.bf16.msra.mxu0 %v1510_v8  ;;  %254 = vmatpush1.bf16.msra.mxu1 %v1552_v15  ;;  %v1649_v31 = vld [vmem:[%s2108_s1 + $0xc] ss:$16 sps:$4 sm:$0xff]   ;;  %v1656_v32 = vld [vmem:[%s2108_s1 + $0x8] ss:$16 sps:$4 sm:$0xff]   ;;  %v44_v33 = vld [vmem:[%s2109_s0] sm:$0xff] }
   0xc   :  { %214 = vmatprep.subr.bf16.mxu0 %v1517_v9  ;;  %255 = vmatprep.subr.bf16.mxu1 %v1558_v16  ;;  %v45_v35 = vld [vmem:[%s2109_s0 + $0x8] sm:$0xff]  ;;  %v47_v45 = vld [vmem:[%s2109_s0 + $0x18] sm:$0xff]  ;;  %v46_v48 = vld [vmem:[%s2109_s0 + $0x10] sm:$0xff] }
   0xf   :  { %215 = vmatpush1.bf16.msra.mxu0 %v1535_v12  ;;  %256 = vmatpush1.bf16.msra.mxu1 %v1576_v19 }
  0x10   :  { %216 = vmatprep.subr.bf16.mxu0 %v1540_v13  ;;  %257 = vmatprep.subr.bf16.mxu1 %v1582_v20 }
  0x13   :  { %217 = vmatpush1.bf16.msra.mxu0 %v1564_v17  ;;  %258 = vmatpush1.bf16.msra.mxu1 %v1600_v23 }
  0x14   :  { %218 = vmatprep.subr.bf16.mxu0 %v1570_v18  ;;  %259 = vmatprep.subr.bf16.mxu1 %v1606_v24 }
  0x17   :  { %219 = vmatpush1.bf16.msra.mxu0 %v1588_v21  ;;  %260 = vmatpush1.bf16.msra.mxu1 %v1624_v27 }
  0x18   :  { %220 = vmatprep.subr.bf16.mxu0 %v1593_v22  ;;  %261 = vmatprep.subr.bf16.mxu1 %v1630_v28 }
  0x1b   :  { %221 = vmatpush1.bf16.msra.mxu0 %v1612_v25  ;;  %262 = vmatpush1.bf16.msra.mxu1 %v1643_v30 }
  0x1c   :  { %222 = vmatprep.subr.bf16.mxu0 %v1618_v26  ;;  %263 = vmatprep.subr.bf16.mxu1 %v1649_v31 }
  0x1f   :  { %223 = vmatpush1.bf16.msra.mxu0 %v1636_v29  ;;  %264 = vmatpush1.bf16.msra.mxu1 %v1656_v32 }
  0x20   :  { %325 = vmatprep.subr.bf16.mxu0 %v1469_v0  ;;  %366 = vmatprep.subr.bf16.mxu1 %v1499_v6 }
  0x22   :  { %241 = vmatmul.mubr.bf16.vlgmr.msra.gmra.mxu0 %v1450_v1  ;;  %282 = vmatmul.mubr.bf16.vlgmr.msra.gmra.mxu1 %v1450_v1 }
  0x23   :  { %326 = vmatpush1.bf16.msra.mxu0 %v1476_v2  ;;  %357 = vmatprep.mubr.bf16.mxu0 %v1450_v1 }
  0x24   :  { %327 = vmatprep.subr.bf16.mxu0 %v1482_v3  ;;  %367 = vmatpush1.bf16.msra.mxu1 %v1504_v7 }
  0x25   :  { %368 = vmatprep.subr.bf16.mxu1 %v1523_v10  ;;  %398 = vmatprep.mubr.bf16.mxu1 %v1450_v1 }
  0x27   :  { %328 = vmatpush1.bf16.msra.mxu0 %v1488_v4 }
  0x28   :  { %329 = vmatprep.subr.bf16.mxu0 %v1494_v5  ;;  %369 = vmatpush1.bf16.msra.mxu1 %v1528_v11 }
  0x29   :  { %370 = vmatprep.subr.bf16.mxu1 %v1545_v14 }
  0x2b   :  { %330 = vmatpush1.bf16.msra.mxu0 %v1510_v8 }
  0x2c   :  { %331 = vmatprep.subr.bf16.mxu0 %v1517_v9  ;;  %371 = vmatpush1.bf16.msra.mxu1 %v1552_v15 }
  0x2d   :  { %372 = vmatprep.subr.bf16.mxu1 %v1558_v16 }
  0x2f   :  { %332 = vmatpush1.bf16.msra.mxu0 %v1535_v12 }
  0x30   :  { %333 = vmatprep.subr.bf16.mxu0 %v1540_v13  ;;  %373 = vmatpush1.bf16.msra.mxu1 %v1576_v19 }
  0x31   :  { %374 = vmatprep.subr.bf16.mxu1 %v1582_v20 }
  0x33   :  { %334 = vmatpush1.bf16.msra.mxu0 %v1564_v17 }
  0x34   :  { %335 = vmatprep.subr.bf16.mxu0 %v1570_v18  ;;  %375 = vmatpush1.bf16.msra.mxu1 %v1600_v23 }
  0x35   :  { %376 = vmatprep.subr.bf16.mxu1 %v1606_v24 }
  0x37   :  { %336 = vmatpush1.bf16.msra.mxu0 %v1588_v21 }
  0x38   :  { %337 = vmatprep.subr.bf16.mxu0 %v1593_v22  ;;  %377 = vmatpush1.bf16.msra.mxu1 %v1624_v27 }
  0x39   :  { %378 = vmatprep.subr.bf16.mxu1 %v1630_v28 }
  0x3b   :  { %338 = vmatpush1.bf16.msra.mxu0 %v1612_v25 }
  0x3c   :  { %339 = vmatprep.subr.bf16.mxu0 %v1618_v26  ;;  %379 = vmatpush1.bf16.msra.mxu1 %v1643_v30 }
  0x3d   :  { %380 = vmatprep.subr.bf16.mxu1 %v1649_v31 }
  0x3f   :  { %340 = vmatpush1.bf16.msra.mxu0 %v1636_v29 }
  0x40   :  { %443 = vmatprep.subr.bf16.mxu0 %v1469_v0  ;;  %381 = vmatpush1.bf16.msra.mxu1 %v1656_v32 }
  0x41   :  { %484 = vmatprep.subr.bf16.mxu1 %v1499_v6 }
  0xe2   :  { %v242_v34 = vpop.f32.mrf.mxu0  ;;  %v283_v42 = vpop.f32.mrf.mxu1 }
  0xe3   :  { %v290_v36 = vadd.f32 %v242_v34, %v44_v33  ;;  %v292_v50 = vadd.f32 %v283_v42, %v46_v48 }
  0xe4   :  { %v244_v37 = vpop.f32.mrf.mxu0  ;;  %v285_v44 = vpop.f32.mrf.mxu1 }
  0xe5   :  { %v1182_v38 = vmul.f32 -1.442695, %v290_v36  ;;  %v291_v39 = vadd.f32 %v244_v37, %v45_v35  ;;  %v293_v49 = vadd.f32 %v285_v44, %v47_v45  ;;  %v1185_v37 = vld [vmem:[%s2109_s0 + $0x20] sm:$0xff] }
  0xe6   :  { %v246_v40 = vpop.f32.mrf.mxu0  ;;  %v287_v46 = vpop.f32.mrf.mxu1 }
  0xe7   :  { %1290 = vpow2.f32 %v1182_v38  ;;  %v1183_v41 = vmul.f32 -1.442695, %v291_v39  ;;  %v1184_v51 = vmul.f32 -1.442695, %v293_v49  ;;  %v1186_v40 = vld [vmem:[%s2109_s0 + $0x28] sm:$0xff] }
  0xe8   :  { %v247_v43 = vpop.f32.mrf.mxu0  ;;  %v288_v47 = vpop.f32.mrf.mxu1 }
  0xe9   :  { %1292 = vpow2.f32 %v1183_v41 }
  0xea   :  { %1294 = vtanh.f32 %v292_v50 }
  0xeb   :  { %1296 = vpow2.f32 %v1184_v51  ;;  %v1188_v51 = vld [vmem:[%s2109_s0 + $0x38] sm:$0xff] }
  0xf4   :  { %v1291_v52 = vpop.eup %1290 }
  0xf5   :  { %v297_v53 = vadd.f32 1.0, %v1291_v52 }
  0xf6   :  { %v1293_v54 = vpop.eup %1292 }
  0xf7   :  { %1298 = vrcp.f32 %v297_v53  ;;  %v303_v55 = vadd.f32 1.0, %v1293_v54  ;;  %v1295_v56 = vpop.eup %1294  ;;  %v1187_v53 = vld [vmem:[%s2109_s0 + $0x30] sm:$0xff] }
  0xf8   :  { %v1297_v57 = vpop.eup %1296 }
  0xf9   :  { %1300 = vrcp.f32 %v303_v55  ;;  %v310_v60 = vadd.f32 1.0, %v1297_v57 }
  0xfb   :  { %1302 = vrcp.f32 %v310_v60 }
 0x104   :  { %v1299_v58 = vpop.eup %1298 }
 0x105   :  { %v314_v62 = vmul.f32 %v1299_v58, %v1295_v56 }
 0x106   :  { %v1301_v59 = vpop.eup %1300 }
 0x107   :  { %v313_v61 = vmul.f32 0.0, %v1301_v59 }
 0x108   :  { %v1303_v33 = vpop.eup %1302 }
 0x109   :  { %v1710_v63 = vadd.f32 %v314_v62, %v313_v61 }
 0x10b   :  { %1304 = vtanh.f32 %v1710_v63 }
 0x118   :  { %v1305_v34 = vpop.eup %1304 }
 0x119   :  { %v317_v35 = vmul.f32 %v1305_v34, %v1303_v33 }
 0x11b   :  { %v318_v36 = vpack.c.bf16 %v317_v35, %v317_v35 }
 0x11d   :  { %319 = vst [vmem:[%s2110_s2] sm:$0xf] %v318_v36  ;;  %358 = vmatmul.mubr.bf16.vlgmr.msra.gmra.mxu0 %v318_v36  ;;  %399 = vmatmul.mubr.bf16.vlgmr.msra.gmra.mxu1 %v318_v36 }
 0x11e   :  { %444 = vmatpush1.bf16.msra.mxu0 %v1476_v2  ;;  %485 = vmatpush1.bf16.msra.mxu1 %v1504_v7 }
 0x11f   :  { %445 = vmatprep.subr.bf16.mxu0 %v1482_v3  ;;  %486 = vmatprep.subr.bf16.mxu1 %v1523_v10 }
 0x120   :  { %475 = vmatprep.mubr.bf16.mxu0 %v1450_v1  ;;  %516 = vmatprep.mubr.bf16.mxu1 %v1450_v1 }
 0x122   :  { %446 = vmatpush1.bf16.msra.mxu0 %v1488_v4  ;;  %487 = vmatpush1.bf16.msra.mxu1 %v1528_v11 }
 0x123   :  { %447 = vmatprep.subr.bf16.mxu0 %v1494_v5  ;;  %488 = vmatprep.subr.bf16.mxu1 %v1545_v14 }
 0x126   :  { %448 = vmatpush1.bf16.msra.mxu0 %v1510_v8  ;;  %489 = vmatpush1.bf16.msra.mxu1 %v1552_v15 }
 0x127   :  { %449 = vmatprep.subr.bf16.mxu0 %v1517_v9  ;;  %490 = vmatprep.subr.bf16.mxu1 %v1558_v16 }
 0x12a   :  { %450 = vmatpush1.bf16.msra.mxu0 %v1535_v12  ;;  %491 = vmatpush1.bf16.msra.mxu1 %v1576_v19 }
 0x12b   :  { %451 = vmatprep.subr.bf16.mxu0 %v1540_v13  ;;  %492 = vmatprep.subr.bf16.mxu1 %v1582_v20 }
 0x12e   :  { %452 = vmatpush1.bf16.msra.mxu0 %v1564_v17  ;;  %493 = vmatpush1.bf16.msra.mxu1 %v1600_v23 }
 0x12f   :  { %453 = vmatprep.subr.bf16.mxu0 %v1570_v18  ;;  %494 = vmatprep.subr.bf16.mxu1 %v1606_v24 }
 0x132   :  { %454 = vmatpush1.bf16.msra.mxu0 %v1588_v21  ;;  %495 = vmatpush1.bf16.msra.mxu1 %v1624_v27 }
 0x133   :  { %455 = vmatprep.subr.bf16.mxu0 %v1593_v22  ;;  %496 = vmatprep.subr.bf16.mxu1 %v1630_v28 }
 0x136   :  { %456 = vmatpush1.bf16.msra.mxu0 %v1612_v25  ;;  %497 = vmatpush1.bf16.msra.mxu1 %v1643_v30 }
 0x137   :  { %457 = vmatprep.subr.bf16.mxu0 %v1618_v26  ;;  %498 = vmatprep.subr.bf16.mxu1 %v1649_v31 }
 0x13a   :  { %458 = vmatpush1.bf16.msra.mxu0 %v1636_v29  ;;  %499 = vmatpush1.bf16.msra.mxu1 %v1656_v32 }
 0x13b   :  { %561 = vmatprep.subr.bf16.mxu0 %v1469_v0  ;;  %602 = vmatprep.subr.bf16.mxu1 %v1499_v6 }
 0x1dd   :  { %v359_v38 = vpop.f32.mrf.mxu0  ;;  %v400_v39 = vpop.f32.mrf.mxu1 }
 0x1de   :  { %v407_v41 = vadd.f32 %v1185_v37, %v359_v38  ;;  %v409_v56 = vadd.f32 %v1187_v53, %v400_v39 }
 0x1df   :  { %v361_v42 = vpop.f32.mrf.mxu0  ;;  %v402_v43 = vpop.f32.mrf.mxu1 }
 0x1e0   :  { %v1189_v44 = vmul.f32 -1.442695, %v407_v41  ;;  %v408_v45 = vadd.f32 %v1186_v40, %v361_v42  ;;  %v410_v52 = vadd.f32 %v1188_v51, %v402_v43 }
 0x1e1   :  { %v363_v46 = vpop.f32.mrf.mxu0  ;;  %v404_v47 = vpop.f32.mrf.mxu1 }
 0x1e2   :  { %1306 = vpow2.f32 %v1189_v44  ;;  %v1190_v48 = vmul.f32 -1.442695, %v408_v45  ;;  %v1191_v54 = vmul.f32 -1.442695, %v410_v52  ;;  %v1194_v44 = vld [vmem:[%s2109_s0 + $0x48] sm:$0xff] }
 0x1e3   :  { %v364_v49 = vpop.f32.mrf.mxu0  ;;  %v405_v50 = vpop.f32.mrf.mxu1 }
 0x1e4   :  { %1308 = vpow2.f32 %v1190_v48 }
 0x1e5   :  { %1310 = vpow2.f32 %v1191_v54 }
 0x1ef   :  { %v1307_v55 = vpop.eup %1306 }
 0x1f0   :  { %v414_v57 = vadd.f32 1.0, %v1307_v55  ;;  %v1196_v55 = vld [vmem:[%s2109_s0 + $0x58] sm:$0xff] }
 0x1f1   :  { %v1309_v58 = vpop.eup %1308 }
 0x1f2   :  { %1312 = vrcp.f32 %v414_v57  ;;  %v420_v59 = vadd.f32 1.0, %v1309_v58  ;;  %v1311_v60 = vpop.eup %1310  ;;  %v1195_v57 = vld [vmem:[%s2109_s0 + $0x50] sm:$0xff] }
 0x1f3   :  { %1314 = vtanh.f32 %v409_v56  ;;  %v427_v34 = vadd.f32 1.0, %v1311_v60 }
 0x1f4   :  { %1316 = vrcp.f32 %v420_v59 }
 0x1f5   :  { %1318 = vrcp.f32 %v427_v34 }
 0x1ff   :  { %v1313_v61 = vpop.eup %1312 }
 0x200   :  { %v1315_v62 = vpop.eup %1314 }
 0x201   :  { %v1317_v33 = vpop.eup %1316  ;;  %v431_v35 = vmul.f32 %v1315_v62, %v1313_v61 }
 0x202   :  { %v430_v36 = vmul.f32 %v1317_v33, %v1710_v63  ;;  %v1319_v38 = vpop.eup %1318  ;;  %v1193_v63 = vld [vmem:[%s2109_s0 + $0x40] sm:$0xff] }
 0x204   :  { %v1763_v37 = vadd.f32 %v431_v35, %v430_v36 }
 0x206   :  { %1320 = vtanh.f32 %v1763_v37 }
 0x213   :  { %v1321_v39 = vpop.eup %1320 }
 0x214   :  { %v434_v40 = vmul.f32 %v1321_v39, %v1319_v38 }
 0x216   :  { %v435_v41 = vpack.c.bf16 %v434_v40, %v434_v40 }
 0x218   :  { %1192 = vst [vmem:[%s2110_s2 + $0x4] sm:$0xf] %v435_v41  ;;  %476 = vmatmul.mubr.bf16.vlgmr.msra.gmra.mxu0 %v435_v41  ;;  %517 = vmatmul.mubr.bf16.vlgmr.msra.gmra.mxu1 %v435_v41 }
 0x219   :  { %562 = vmatpush1.bf16.msra.mxu0 %v1476_v2  ;;  %603 = vmatpush1.bf16.msra.mxu1 %v1504_v7 }
 0x21a   :  { %563 = vmatprep.subr.bf16.mxu0 %v1482_v3  ;;  %604 = vmatprep.subr.bf16.mxu1 %v1523_v10 }
 0x21b   :  { %593 = vmatprep.mubr.bf16.mxu0 %v1450_v1  ;;  %634 = vmatprep.mubr.bf16.mxu1 %v1450_v1 }
 0x21d   :  { %564 = vmatpush1.bf16.msra.mxu0 %v1488_v4  ;;  %605 = vmatpush1.bf16.msra.mxu1 %v1528_v11 }
 0x21e   :  { %565 = vmatprep.subr.bf16.mxu0 %v1494_v5  ;;  %606 = vmatprep.subr.bf16.mxu1 %v1545_v14 }
 0x221   :  { %566 = vmatpush1.bf16.msra.mxu0 %v1510_v8  ;;  %607 = vmatpush1.bf16.msra.mxu1 %v1552_v15 }
 0x222   :  { %567 = vmatprep.subr.bf16.mxu0 %v1517_v9  ;;  %608 = vmatprep.subr.bf16.mxu1 %v1558_v16 }
 0x225   :  { %568 = vmatpush1.bf16.msra.mxu0 %v1535_v12  ;;  %609 = vmatpush1.bf16.msra.mxu1 %v1576_v19 }
 0x226   :  { %569 = vmatprep.subr.bf16.mxu0 %v1540_v13  ;;  %610 = vmatprep.subr.bf16.mxu1 %v1582_v20 }
 0x229   :  { %570 = vmatpush1.bf16.msra.mxu0 %v1564_v17  ;;  %611 = vmatpush1.bf16.msra.mxu1 %v1600_v23 }
 0x22a   :  { %571 = vmatprep.subr.bf16.mxu0 %v1570_v18  ;;  %612 = vmatprep.subr.bf16.mxu1 %v1606_v24 }
 0x22d   :  { %572 = vmatpush1.bf16.msra.mxu0 %v1588_v21  ;;  %613 = vmatpush1.bf16.msra.mxu1 %v1624_v27 }
 0x22e   :  { %573 = vmatprep.subr.bf16.mxu0 %v1593_v22  ;;  %614 = vmatprep.subr.bf16.mxu1 %v1630_v28 }
 0x231   :  { %574 = vmatpush1.bf16.msra.mxu0 %v1612_v25  ;;  %615 = vmatpush1.bf16.msra.mxu1 %v1643_v30 }
 0x232   :  { %575 = vmatprep.subr.bf16.mxu0 %v1618_v26  ;;  %616 = vmatprep.subr.bf16.mxu1 %v1649_v31 }
 0x235   :  { %576 = vmatpush1.bf16.msra.mxu0 %v1636_v29  ;;  %617 = vmatpush1.bf16.msra.mxu1 %v1656_v32 }
 0x236   :  { %679 = vmatprep.subr.bf16.mxu0 %v1469_v0  ;;  %720 = vmatprep.subr.bf16.mxu1 %v1499_v6 }
 0x2d8   :  { %v477_v42 = vpop.f32.mrf.mxu0  ;;  %v518_v43 = vpop.f32.mrf.mxu1 }
 0x2d9   :  { %v525_v45 = vadd.f32 %v1193_v63, %v477_v42  ;;  %v527_v60 = vadd.f32 %v1195_v57, %v518_v43 }
 0x2da   :  { %v479_v46 = vpop.f32.mrf.mxu0  ;;  %v520_v47 = vpop.f32.mrf.mxu1 }
 0x2db   :  { %v1197_v48 = vmul.f32 -1.442695, %v525_v45  ;;  %v526_v49 = vadd.f32 %v1194_v44, %v479_v46  ;;  %v528_v56 = vadd.f32 %v1196_v55, %v520_v47 }
 0x2dc   :  { %v481_v50 = vpop.f32.mrf.mxu0  ;;  %v522_v51 = vpop.f32.mrf.mxu1 }
 0x2dd   :  { %1322 = vpow2.f32 %v1197_v48  ;;  %v1198_v52 = vmul.f32 -1.442695, %v526_v49  ;;  %v1199_v58 = vmul.f32 -1.442695, %v528_v56  ;;  %v1202_v48 = vld [vmem:[%s2109_s0 + $0x68] sm:$0xff] }
 0x2de   :  { %v482_v53 = vpop.f32.mrf.mxu0  ;;  %v523_v54 = vpop.f32.mrf.mxu1 }
 0x2df   :  { %1324 = vpow2.f32 %v1198_v52 }
 0x2e0   :  { %1326 = vpow2.f32 %v1199_v58 }
 0x2ea   :  { %v1323_v59 = vpop.eup %1322 }
 0x2eb   :  { %v532_v61 = vadd.f32 1.0, %v1323_v59  ;;  %v1204_v59 = vld [vmem:[%s2109_s0 + $0x78] sm:$0xff] }
 0x2ec   :  { %v1325_v62 = vpop.eup %1324 }
 0x2ed   :  { %1328 = vrcp.f32 %v532_v61  ;;  %v538_v33 = vadd.f32 1.0, %v1325_v62  ;;  %v1327_v34 = vpop.eup %1326  ;;  %v1203_v61 = vld [vmem:[%s2109_s0 + $0x70] sm:$0xff] }
 0x2ee   :  { %1330 = vtanh.f32 %v527_v60  ;;  %v545_v39 = vadd.f32 1.0, %v1327_v34 }
 0x2ef   :  { %1332 = vrcp.f32 %v538_v33 }
 0x2f0   :  { %1334 = vrcp.f32 %v545_v39 }
 0x2fa   :  { %v1329_v35 = vpop.eup %1328 }
 0x2fb   :  { %v1331_v36 = vpop.eup %1330 }
 0x2fc   :  { %v1333_v38 = vpop.eup %1332  ;;  %v549_v40 = vmul.f32 %v1331_v36, %v1329_v35 }
 0x2fd   :  { %v548_v41 = vmul.f32 %v1333_v38, %v1763_v37  ;;  %v1335_v42 = vpop.eup %1334  ;;  %v1201_v37 = vld [vmem:[%s2109_s0 + $0x60] sm:$0xff] }
 0x2ff   :  { %v1816_v63 = vadd.f32 %v549_v40, %v548_v41 }
 0x301   :  { %1336 = vtanh.f32 %v1816_v63 }
 0x30e   :  { %v1337_v43 = vpop.eup %1336 }
 0x30f   :  { %v552_v44 = vmul.f32 %v1337_v43, %v1335_v42 }
 0x311   :  { %v553_v45 = vpack.c.bf16 %v552_v44, %v552_v44 }
 0x313   :  { %1200 = vst [vmem:[%s2110_s2 + $0x8] sm:$0xf] %v553_v45  ;;  %594 = vmatmul.mubr.bf16.vlgmr.msra.gmra.mxu0 %v553_v45  ;;  %635 = vmatmul.mubr.bf16.vlgmr.msra.gmra.mxu1 %v553_v45 }
 0x314   :  { %680 = vmatpush1.bf16.msra.mxu0 %v1476_v2  ;;  %721 = vmatpush1.bf16.msra.mxu1 %v1504_v7 }
 0x315   :  { %681 = vmatprep.subr.bf16.mxu0 %v1482_v3  ;;  %722 = vmatprep.subr.bf16.mxu1 %v1523_v10 }
 0x316   :  { %711 = vmatprep.mubr.bf16.mxu0 %v1450_v1  ;;  %752 = vmatprep.mubr.bf16.mxu1 %v1450_v1 }
 0x318   :  { %682 = vmatpush1.bf16.msra.mxu0 %v1488_v4  ;;  %723 = vmatpush1.bf16.msra.mxu1 %v1528_v11 }
 0x319   :  { %683 = vmatprep.subr.bf16.mxu0 %v1494_v5  ;;  %724 = vmatprep.subr.bf16.mxu1 %v1545_v14 }
 0x31c   :  { %684 = vmatpush1.bf16.msra.mxu0 %v1510_v8  ;;  %725 = vmatpush1.bf16.msra.mxu1 %v1552_v15 }
 0x31d   :  { %685 = vmatprep.subr.bf16.mxu0 %v1517_v9  ;;  %726 = vmatprep.subr.bf16.mxu1 %v1558_v16 }
 0x320   :  { %686 = vmatpush1.bf16.msra.mxu0 %v1535_v12  ;;  %727 = vmatpush1.bf16.msra.mxu1 %v1576_v19 }
 0x321   :  { %687 = vmatprep.subr.bf16.mxu0 %v1540_v13  ;;  %728 = vmatprep.subr.bf16.mxu1 %v1582_v20 }
 0x324   :  { %688 = vmatpush1.bf16.msra.mxu0 %v1564_v17  ;;  %729 = vmatpush1.bf16.msra.mxu1 %v1600_v23 }
 0x325   :  { %689 = vmatprep.subr.bf16.mxu0 %v1570_v18  ;;  %730 = vmatprep.subr.bf16.mxu1 %v1606_v24 }
 0x328   :  { %690 = vmatpush1.bf16.msra.mxu0 %v1588_v21  ;;  %731 = vmatpush1.bf16.msra.mxu1 %v1624_v27 }
 0x329   :  { %691 = vmatprep.subr.bf16.mxu0 %v1593_v22  ;;  %732 = vmatprep.subr.bf16.mxu1 %v1630_v28 }
 0x32c   :  { %692 = vmatpush1.bf16.msra.mxu0 %v1612_v25  ;;  %733 = vmatpush1.bf16.msra.mxu1 %v1643_v30 }
 0x32d   :  { %693 = vmatprep.subr.bf16.mxu0 %v1618_v26  ;;  %734 = vmatprep.subr.bf16.mxu1 %v1649_v31 }
 0x330   :  { %694 = vmatpush1.bf16.msra.mxu0 %v1636_v29  ;;  %735 = vmatpush1.bf16.msra.mxu1 %v1656_v32 }
 0x331   :  { %797 = vmatprep.subr.bf16.mxu0 %v1469_v0  ;;  %838 = vmatprep.subr.bf16.mxu1 %v1499_v6 }
 0x3d3   :  { %v595_v46 = vpop.f32.mrf.mxu0  ;;  %v636_v47 = vpop.f32.mrf.mxu1 }
 0x3d4   :  { %v643_v49 = vadd.f32 %v1201_v37, %v595_v46  ;;  %v645_v34 = vadd.f32 %v1203_v61, %v636_v47  ;;  %v1212_v61 = vld [vmem:[%s2109_s0 + $0x98] sm:$0xff] }
 0x3d5   :  { %v597_v50 = vpop.f32.mrf.mxu0  ;;  %v638_v51 = vpop.f32.mrf.mxu1 }
 0x3d6   :  { %v1205_v52 = vmul.f32 -1.442695, %v643_v49  ;;  %v644_v53 = vadd.f32 %v1202_v48, %v597_v50  ;;  %v646_v60 = vadd.f32 %v1204_v59, %v638_v51 }
 0x3d7   :  { %v599_v54 = vpop.f32.mrf.mxu0  ;;  %v640_v55 = vpop.f32.mrf.mxu1 }
 0x3d8   :  { %1338 = vpow2.f32 %v1205_v52  ;;  %v1206_v56 = vmul.f32 -1.442695, %v644_v53  ;;  %v1207_v62 = vmul.f32 -1.442695, %v646_v60  ;;  %v1210_v52 = vld [vmem:[%s2109_s0 + $0x88] sm:$0xff] }
 0x3d9   :  { %v600_v57 = vpop.f32.mrf.mxu0  ;;  %v641_v58 = vpop.f32.mrf.mxu1 }
 0x3da   :  { %1340 = vpow2.f32 %v1206_v56 }
 0x3db   :  { %1342 = vpow2.f32 %v1207_v62 }
 0x3e5   :  { %v1339_v33 = vpop.eup %1338 }
 0x3e6   :  { %v650_v35 = vadd.f32 1.0, %v1339_v33  ;;  %v1211_v33 = vld [vmem:[%s2109_s0 + $0x90] sm:$0xff] }
 0x3e7   :  { %v1341_v36 = vpop.eup %1340 }
 0x3e8   :  { %1344 = vrcp.f32 %v650_v35  ;;  %v656_v38 = vadd.f32 1.0, %v1341_v36  ;;  %v1343_v39 = vpop.eup %1342 }
 0x3e9   :  { %1346 = vtanh.f32 %v645_v34  ;;  %v663_v43 = vadd.f32 1.0, %v1343_v39 }
 0x3ea   :  { %1348 = vrcp.f32 %v656_v38 }
 0x3eb   :  { %1350 = vrcp.f32 %v663_v43 }
 0x3f5   :  { %v1345_v40 = vpop.eup %1344 }
 0x3f6   :  { %v1347_v41 = vpop.eup %1346 }
 0x3f7   :  { %v1349_v42 = vpop.eup %1348  ;;  %v667_v44 = vmul.f32 %v1347_v41, %v1345_v40 }
 0x3f8   :  { %v666_v45 = vmul.f32 %v1349_v42, %v1816_v63  ;;  %v1351_v46 = vpop.eup %1350  ;;  %v1209_v63 = vld [vmem:[%s2109_s0 + $0x80] sm:$0xff] }
 0x3fa   :  { %v1869_v37 = vadd.f32 %v667_v44, %v666_v45 }
 0x3fc   :  { %1352 = vtanh.f32 %v1869_v37 }
 0x409   :  { %v1353_v47 = vpop.eup %1352 }
 0x40a   :  { %v670_v48 = vmul.f32 %v1353_v47, %v1351_v46 }
 0x40c   :  { %v671_v49 = vpack.c.bf16 %v670_v48, %v670_v48 }
 0x40e   :  { %1208 = vst [vmem:[%s2110_s2 + $0xc] sm:$0xf] %v671_v49  ;;  %712 = vmatmul.mubr.bf16.vlgmr.msra.gmra.mxu0 %v671_v49  ;;  %753 = vmatmul.mubr.bf16.vlgmr.msra.gmra.mxu1 %v671_v49 }
 0x40f   :  { %798 = vmatpush1.bf16.msra.mxu0 %v1476_v2  ;;  %839 = vmatpush1.bf16.msra.mxu1 %v1504_v7 }
 0x410   :  { %799 = vmatprep.subr.bf16.mxu0 %v1482_v3  ;;  %840 = vmatprep.subr.bf16.mxu1 %v1523_v10 }
 0x411   :  { %829 = vmatprep.mubr.bf16.mxu0 %v1450_v1  ;;  %870 = vmatprep.mubr.bf16.mxu1 %v1450_v1 }
 0x413   :  { %800 = vmatpush1.bf16.msra.mxu0 %v1488_v4  ;;  %841 = vmatpush1.bf16.msra.mxu1 %v1528_v11 }
 0x414   :  { %801 = vmatprep.subr.bf16.mxu0 %v1494_v5  ;;  %842 = vmatprep.subr.bf16.mxu1 %v1545_v14 }
 0x417   :  { %802 = vmatpush1.bf16.msra.mxu0 %v1510_v8  ;;  %843 = vmatpush1.bf16.msra.mxu1 %v1552_v15 }
 0x418   :  { %803 = vmatprep.subr.bf16.mxu0 %v1517_v9  ;;  %844 = vmatprep.subr.bf16.mxu1 %v1558_v16 }
 0x41b   :  { %804 = vmatpush1.bf16.msra.mxu0 %v1535_v12  ;;  %845 = vmatpush1.bf16.msra.mxu1 %v1576_v19 }
 0x41c   :  { %805 = vmatprep.subr.bf16.mxu0 %v1540_v13  ;;  %846 = vmatprep.subr.bf16.mxu1 %v1582_v20 }
 0x41f   :  { %806 = vmatpush1.bf16.msra.mxu0 %v1564_v17  ;;  %847 = vmatpush1.bf16.msra.mxu1 %v1600_v23 }
 0x420   :  { %807 = vmatprep.subr.bf16.mxu0 %v1570_v18  ;;  %848 = vmatprep.subr.bf16.mxu1 %v1606_v24 }
 0x423   :  { %808 = vmatpush1.bf16.msra.mxu0 %v1588_v21  ;;  %849 = vmatpush1.bf16.msra.mxu1 %v1624_v27 }
 0x424   :  { %809 = vmatprep.subr.bf16.mxu0 %v1593_v22  ;;  %850 = vmatprep.subr.bf16.mxu1 %v1630_v28 }
 0x427   :  { %810 = vmatpush1.bf16.msra.mxu0 %v1612_v25  ;;  %851 = vmatpush1.bf16.msra.mxu1 %v1643_v30 }
 0x428   :  { %811 = vmatprep.subr.bf16.mxu0 %v1618_v26  ;;  %852 = vmatprep.subr.bf16.mxu1 %v1649_v31 }
 0x42b   :  { %812 = vmatpush1.bf16.msra.mxu0 %v1636_v29  ;;  %853 = vmatpush1.bf16.msra.mxu1 %v1656_v32 }
 0x42c   :  { %915 = vmatprep.subr.bf16.mxu0 %v1469_v0  ;;  %956 = vmatprep.subr.bf16.mxu1 %v1499_v6 }
 0x4ce   :  { %v713_v50 = vpop.f32.mrf.mxu0  ;;  %v754_v51 = vpop.f32.mrf.mxu1 }
 0x4cf   :  { %v761_v53 = vadd.f32 %v1209_v63, %v713_v50  ;;  %v763_v36 = vadd.f32 %v1211_v33, %v754_v51  ;;  %v1427_v33 = vld [vmem:[%s2108_s1 + $0xac] ss:$16 sps:$4 sm:$0xff]  }
 0x4d0   :  { %v715_v54 = vpop.f32.mrf.mxu0  ;;  %v756_v55 = vpop.f32.mrf.mxu1 }
 0x4d1   :  { %v1213_v56 = vmul.f32 -1.442695, %v761_v53  ;;  %v762_v57 = vadd.f32 %v1210_v52, %v715_v54  ;;  %v764_v62 = vadd.f32 %v1212_v61, %v756_v55  ;;  %v1425_v61 = vld [vmem:[%s2108_s1 + $0xc8] ss:$16 sps:$4 sm:$0xff]  }
 0x4d2   :  { %v717_v58 = vpop.f32.mrf.mxu0  ;;  %v758_v59 = vpop.f32.mrf.mxu1 }
 0x4d3   :  { %1354 = vpow2.f32 %v1213_v56  ;;  %v1214_v0 = vmul.f32 -1.442695, %v762_v57  ;;  %v1215_v34 = vmul.f32 -1.442695, %v764_v62  ;;  %v1420_v58 = vld [vmem:[%s2108_s1 + $0xe0] ss:$16 sps:$4 sm:$0xff]  }
 0x4d4   :  { %v718_v6 = vpop.f32.mrf.mxu0  ;;  %v759_v60 = vpop.f32.mrf.mxu1  ;;  %v1421_v59 = vld [vmem:[%s2108_s1 + $0xe8] ss:$16 sps:$4 sm:$0xff]   ;;  %v1426_v62 = vld [vmem:[%s2108_s1 + $0xa4] ss:$16 sps:$4 sm:$0xff]  }
 0x4d5   :  { %1356 = vpow2.f32 %v1214_v0  ;;  %v1422_v0 = vld [vmem:[%s2108_s1 + $0xc4] ss:$16 sps:$4 sm:$0xff]   ;;  %v1423_v6 = vld [vmem:[%s2108_s1 + $0xcc] ss:$16 sps:$4 sm:$0xff]   ;;  %v1424_v60 = vld [vmem:[%s2108_s1 + $0xc0] ss:$16 sps:$4 sm:$0xff]  }
 0x4d6   :  { %1358 = vpow2.f32 %v1215_v34  ;;  %v1429_v34 = vld [vmem:[%s2108_s1 + $0xa8] ss:$16 sps:$4 sm:$0xff]  }
 0x4e0   :  { %v1355_v35 = vpop.eup %1354 }
 0x4e1   :  { %v768_v38 = vadd.f32 1.0, %v1355_v35  ;;  %v1430_v35 = vld [vmem:[%s2108_s1 + $0x84] ss:$16 sps:$4 sm:$0xff]  }
 0x4e2   :  { %v1357_v39 = vpop.eup %1356 }
 0x4e3   :  { %1360 = vrcp.f32 %v768_v38  ;;  %v774_v40 = vadd.f32 1.0, %v1357_v39  ;;  %v1359_v41 = vpop.eup %1358  ;;  %v1432_v38 = vld [vmem:[%s2108_s1 + $0x80] ss:$16 sps:$4 sm:$0xff]   ;;  %v1433_v39 = vld [vmem:[%s2108_s1 + $0x88] ss:$16 sps:$4 sm:$0xff]  }
 0x4e4   :  { %1362 = vtanh.f32 %v763_v36  ;;  %v781_v45 = vadd.f32 1.0, %v1359_v41  ;;  %v1431_v36 = vld [vmem:[%s2108_s1 + $0x8c] ss:$16 sps:$4 sm:$0xff]  }
 0x4e5   :  { %1364 = vrcp.f32 %v774_v40  ;;  %v1434_v40 = vld [vmem:[%s2108_s1 + $0x64] ss:$16 sps:$4 sm:$0xff]   ;;  %v1435_v41 = vld [vmem:[%s2108_s1 + $0x6c] ss:$16 sps:$4 sm:$0xff]  }
 0x4e6   :  { %1366 = vrcp.f32 %v781_v45  ;;  %v1439_v45 = vld [vmem:[%s2108_s1 + $0x4c] ss:$16 sps:$4 sm:$0xff]  }
 0x4f0   :  { %v1361_v42 = vpop.eup %1360 }
 0x4f1   :  { %v1363_v43 = vpop.eup %1362 }
 0x4f2   :  { %v1365_v44 = vpop.eup %1364  ;;  %v785_v46 = vmul.f32 %v1363_v43, %v1361_v42  ;;  %v1436_v42 = vld [vmem:[%s2108_s1 + $0x60] ss:$16 sps:$4 sm:$0xff]   ;;  %v1437_v43 = vld [vmem:[%s2108_s1 + $0x68] ss:$16 sps:$4 sm:$0xff]  }
 0x4f3   :  { %v784_v47 = vmul.f32 %v1365_v44, %v1869_v37  ;;  %v1367_v49 = vpop.eup %1366  ;;  %v1438_v44 = vld [vmem:[%s2108_s1 + $0x44] ss:$16 sps:$4 sm:$0xff]  }
 0x4f5   :  { %v1922_v48 = vadd.f32 %v785_v46, %v784_v47  ;;  %v1440_v46 = vld [vmem:[%s2108_s1 + $0x40] ss:$16 sps:$4 sm:$0xff]   ;;  %v1441_v47 = vld [vmem:[%s2108_s1 + $0x48] ss:$16 sps:$4 sm:$0xff]  }
 0x4f7   :  { %1368 = vtanh.f32 %v1922_v48 }
 0x504   :  { %v1369_v63 = vpop.eup %1368 }
 0x505   :  { %v788_v50 = vmul.f32 %v1369_v63, %v1367_v49  ;;  %v1443_v49 = vld [vmem:[%s2108_s1 + $0x2c] ss:$16 sps:$4 sm:$0xff]   ;;  %v1444_v63 = vld [vmem:[%s2108_s1 + $0x20] ss:$16 sps:$4 sm:$0xff]  }
 0x507   :  { %v789_v51 = vpack.c.bf16 %v788_v50, %v788_v50  ;;  %v1445_v50 = vld [vmem:[%s2108_s1 + $0x28] ss:$16 sps:$4 sm:$0xff]  }
 0x509   :  { %1216 = vst [vmem:[%s2110_s2 + $0x10] sm:$0xf] %v789_v51  ;;  %830 = vmatmul.mubr.bf16.vlgmr.msra.gmra.mxu0 %v789_v51  ;;  %871 = vmatmul.mubr.bf16.vlgmr.msra.gmra.mxu1 %v789_v51  ;;  %v1446_v51 = vld [vmem:[%s2108_s1 + $0x4] ss:$16 sps:$4 sm:$0xff]  }
 0x50a   :  { %916 = vmatpush1.bf16.msra.mxu0 %v1476_v2  ;;  %957 = vmatpush1.bf16.msra.mxu1 %v1504_v7  ;;  %v1418_v2 = vld [vmem:[%s2108_s1 + $0xe4] ss:$16 sps:$4 sm:$0xff]  }
 0x50b   :  { %917 = vmatprep.subr.bf16.mxu0 %v1482_v3  ;;  %958 = vmatprep.subr.bf16.mxu1 %v1523_v10  ;;  %v1419_v3 = vld [vmem:[%s2108_s1 + $0xec] ss:$16 sps:$4 sm:$0xff]  }
 0x50c   :  { %947 = vmatprep.mubr.bf16.mxu0 %v1450_v1  ;;  %988 = vmatprep.mubr.bf16.mxu1 %v1450_v1 }
 0x50e   :  { %918 = vmatpush1.bf16.msra.mxu0 %v1488_v4  ;;  %959 = vmatpush1.bf16.msra.mxu1 %v1528_v11  ;;  %v1217_v4 = vld [vmem:[%s2109_s0 + $0xa0] sm:$0xff] }
 0x50f   :  { %919 = vmatprep.subr.bf16.mxu0 %v1494_v5  ;;  %960 = vmatprep.subr.bf16.mxu1 %v1545_v14 }
 0x512   :  { %920 = vmatpush1.bf16.msra.mxu0 %v1510_v8  ;;  %961 = vmatpush1.bf16.msra.mxu1 %v1552_v15  ;;  %v1218_v8 = vld [vmem:[%s2109_s0 + $0xa8] sm:$0xff] }
 0x513   :  { %921 = vmatprep.subr.bf16.mxu0 %v1517_v9  ;;  %962 = vmatprep.subr.bf16.mxu1 %v1558_v16 }
 0x516   :  { %922 = vmatpush1.bf16.msra.mxu0 %v1535_v12  ;;  %963 = vmatpush1.bf16.msra.mxu1 %v1576_v19  ;;  %v1220_v19 = vld [vmem:[%s2109_s0 + $0xb8] sm:$0xff] }
 0x517   :  { %923 = vmatprep.subr.bf16.mxu0 %v1540_v13  ;;  %964 = vmatprep.subr.bf16.mxu1 %v1582_v20 }
 0x51a   :  { %924 = vmatpush1.bf16.msra.mxu0 %v1564_v17  ;;  %965 = vmatpush1.bf16.msra.mxu1 %v1600_v23 }
 0x51b   :  { %925 = vmatprep.subr.bf16.mxu0 %v1570_v18  ;;  %966 = vmatprep.subr.bf16.mxu1 %v1606_v24 }
 0x51e   :  { %926 = vmatpush1.bf16.msra.mxu0 %v1588_v21  ;;  %967 = vmatpush1.bf16.msra.mxu1 %v1624_v27  ;;  %v1219_v21 = vld [vmem:[%s2109_s0 + $0xb0] sm:$0xff] }
 0x51f   :  { %927 = vmatprep.subr.bf16.mxu0 %v1593_v22  ;;  %968 = vmatprep.subr.bf16.mxu1 %v1630_v28 }
 0x522   :  { %928 = vmatpush1.bf16.msra.mxu0 %v1612_v25  ;;  %969 = vmatpush1.bf16.msra.mxu1 %v1643_v30 }
 0x523   :  { %929 = vmatprep.subr.bf16.mxu0 %v1618_v26  ;;  %970 = vmatprep.subr.bf16.mxu1 %v1649_v31 }
 0x526   :  { %930 = vmatpush1.bf16.msra.mxu0 %v1636_v29  ;;  %971 = vmatpush1.bf16.msra.mxu1 %v1656_v32 }
 0x527   :  { %1033 = vmatprep.subr.bf16.mxu0 %v1418_v2  ;;  %1074 = vmatprep.subr.bf16.mxu1 %v1419_v3  ;;  %v1447_v2 = vld [vmem:[%s2108_s1 + $0xc] ss:$16 sps:$4 sm:$0xff]   ;;  %v1448_v3 = vld [vmem:[%s2108_s1] ss:$16 sps:$4 sm:$0xff]  }
 0x5c9   :  { %v831_v5 = vpop.f32.mrf.mxu0  ;;  %v872_v7 = vpop.f32.mrf.mxu1 }
 0x5ca   :  { %v879_v9 = vadd.f32 %v1217_v4, %v831_v5  ;;  %v881_v24 = vadd.f32 %v1219_v21, %v872_v7  ;;  %v1449_v4 = vld [vmem:[%s2108_s1 + $0x8] ss:$16 sps:$4 sm:$0xff]   ;;  %v1225_v5 = vld [vmem:[%s2109_s0 + $0xc0] sm:$0xff] }
 0x5cb   :  { %v833_v10 = vpop.f32.mrf.mxu0  ;;  %v874_v11 = vpop.f32.mrf.mxu1 }
 0x5cc   :  { %v1221_v12 = vmul.f32 -1.442695, %v879_v9  ;;  %v880_v13 = vadd.f32 %v1218_v8, %v833_v10  ;;  %v882_v20 = vadd.f32 %v1220_v19, %v874_v11  ;;  %v1226_v9 = vld [vmem:[%s2109_s0 + $0xc8] sm:$0xff] }
 0x5cd   :  { %v835_v14 = vpop.f32.mrf.mxu0  ;;  %v876_v15 = vpop.f32.mrf.mxu1 }
 0x5ce   :  { %1370 = vpow2.f32 %v1221_v12  ;;  %v1222_v16 = vmul.f32 -1.442695, %v880_v13  ;;  %v1223_v22 = vmul.f32 -1.442695, %v882_v20  ;;  %v1228_v20 = vld [vmem:[%s2109_s0 + $0xd8] sm:$0xff] }
 0x5cf   :  { %v836_v17 = vpop.f32.mrf.mxu0  ;;  %v877_v18 = vpop.f32.mrf.mxu1 }
 0x5d0   :  { %1372 = vpow2.f32 %v1222_v16 }
 0x5d1   :  { %1374 = vpow2.f32 %v1223_v22  ;;  %v1227_v22 = vld [vmem:[%s2109_s0 + $0xd0] sm:$0xff] }
 0x5db   :  { %v1371_v23 = vpop.eup %1370 }
 0x5dc   :  { %v886_v25 = vadd.f32 1.0, %v1371_v23 }
 0x5dd   :  { %v1373_v26 = vpop.eup %1372 }
 0x5de   :  { %1376 = vrcp.f32 %v886_v25  ;;  %v892_v27 = vadd.f32 1.0, %v1373_v26  ;;  %v1375_v28 = vpop.eup %1374 }
 0x5df   :  { %1378 = vtanh.f32 %v881_v24  ;;  %v899_v32 = vadd.f32 1.0, %v1375_v28 }
 0x5e0   :  { %1380 = vrcp.f32 %v892_v27 }
 0x5e1   :  { %1382 = vrcp.f32 %v899_v32 }
 0x5eb   :  { %v1377_v29 = vpop.eup %1376 }
 0x5ec   :  { %v1379_v30 = vpop.eup %1378 }
 0x5ed   :  { %v1381_v31 = vpop.eup %1380  ;;  %v903_v37 = vmul.f32 %v1379_v30, %v1377_v29 }
 0x5ee   :  { %v902_v52 = vmul.f32 %v1381_v31, %v1922_v48  ;;  %v1383_v54 = vpop.eup %1382  ;;  %v1442_v48 = vld [vmem:[%s2108_s1 + $0x24] ss:$16 sps:$4 sm:$0xff]  }
 0x5f0   :  { %v1979_v53 = vadd.f32 %v903_v37, %v902_v52 }
 0x5f2   :  { %1384 = vtanh.f32 %v1979_v53 }
 0x5ff   :  { %v1385_v55 = vpop.eup %1384 }
 0x600   :  { %v906_v56 = vmul.f32 %v1385_v55, %v1383_v54 }
 0x602   :  { %v907_v57 = vpack.c.bf16 %v906_v56, %v906_v56 }
 0x604   :  { %1224 = vst [vmem:[%s2110_s2 + $0x14] sm:$0xf] %v907_v57  ;;  %948 = vmatmul.mubr.bf16.vlgmr.msra.gmra.mxu0 %v907_v57  ;;  %989 = vmatmul.mubr.bf16.vlgmr.msra.gmra.mxu1 %v907_v57 }
 0x605   :  { %1034 = vmatpush1.bf16.msra.mxu0 %v1420_v58  ;;  %1075 = vmatpush1.bf16.msra.mxu1 %v1421_v59 }
 0x606   :  { %1035 = vmatprep.subr.bf16.mxu0 %v1422_v0  ;;  %1076 = vmatprep.subr.bf16.mxu1 %v1423_v6  ;;  %v1233_v0 = vld [vmem:[%s2109_s0 + $0xe0] sm:$0xff] }
 0x607   :  { %1065 = vmatprep.mubr.bf16.mxu0 %v1450_v1  ;;  %1106 = vmatprep.mubr.bf16.mxu1 %v1450_v1  ;;  %v1428_v1 = vld [vmem:[%s2108_s1 + $0xa0] ss:$16 sps:$4 sm:$0xff]  }
 0x609   :  { %1036 = vmatpush1.bf16.msra.mxu0 %v1424_v60  ;;  %1077 = vmatpush1.bf16.msra.mxu1 %v1425_v61 }
 0x60a   :  { %1037 = vmatprep.subr.bf16.mxu0 %v1426_v62  ;;  %1078 = vmatprep.subr.bf16.mxu1 %v1427_v33 }
 0x60d   :  { %1038 = vmatpush1.bf16.msra.mxu0 %v1428_v1  ;;  %1079 = vmatpush1.bf16.msra.mxu1 %v1429_v34 }
 0x60e   :  { %1039 = vmatprep.subr.bf16.mxu0 %v1430_v35  ;;  %1080 = vmatprep.subr.bf16.mxu1 %v1431_v36 }
 0x611   :  { %1040 = vmatpush1.bf16.msra.mxu0 %v1432_v38  ;;  %1081 = vmatpush1.bf16.msra.mxu1 %v1433_v39 }
 0x612   :  { %1041 = vmatprep.subr.bf16.mxu0 %v1434_v40  ;;  %1082 = vmatprep.subr.bf16.mxu1 %v1435_v41  ;;  %v1236_v41 = vld [vmem:[%s2109_s0 + $0xf8] sm:$0xff] }
 0x615   :  { %1042 = vmatpush1.bf16.msra.mxu0 %v1436_v42  ;;  %1083 = vmatpush1.bf16.msra.mxu1 %v1437_v43  ;;  %v1235_v43 = vld [vmem:[%s2109_s0 + $0xf0] sm:$0xff] }
 0x616   :  { %1043 = vmatprep.subr.bf16.mxu0 %v1438_v44  ;;  %1084 = vmatprep.subr.bf16.mxu1 %v1439_v45 }
 0x619   :  { %1044 = vmatpush1.bf16.msra.mxu0 %v1440_v46  ;;  %1085 = vmatpush1.bf16.msra.mxu1 %v1441_v47 }
 0x61a   :  { %1045 = vmatprep.subr.bf16.mxu0 %v1442_v48  ;;  %1086 = vmatprep.subr.bf16.mxu1 %v1443_v49 }
 0x61d   :  { %1046 = vmatpush1.bf16.msra.mxu0 %v1444_v63  ;;  %1087 = vmatpush1.bf16.msra.mxu1 %v1445_v50 }
 0x61e   :  { %1047 = vmatprep.subr.bf16.mxu0 %v1446_v51  ;;  %1088 = vmatprep.subr.bf16.mxu1 %v1447_v2 }
 0x621   :  { %1048 = vmatpush1.bf16.msra.mxu0 %v1448_v3  ;;  %1089 = vmatpush1.bf16.msra.mxu1 %v1449_v4 }
 0x6c4   :  { %v949_v7 = vpop.f32.mrf.mxu0  ;;  %v990_v8 = vpop.f32.mrf.mxu1 }
 0x6c5   :  { %v997_v10 = vadd.f32 %v1225_v5, %v949_v7  ;;  %v999_v25 = vadd.f32 %v1227_v22, %v990_v8 }
 0x6c6   :  { %v951_v11 = vpop.f32.mrf.mxu0  ;;  %v992_v12 = vpop.f32.mrf.mxu1 }
 0x6c7   :  { %v1229_v13 = vmul.f32 -1.442695, %v997_v10  ;;  %v998_v14 = vadd.f32 %v1226_v9, %v951_v11  ;;  %v1000_v21 = vadd.f32 %v1228_v20, %v992_v12 }
 0x6c8   :  { %v953_v15 = vpop.f32.mrf.mxu0  ;;  %v994_v16 = vpop.f32.mrf.mxu1 }
 0x6c9   :  { %1386 = vpow2.f32 %v1229_v13  ;;  %v1230_v17 = vmul.f32 -1.442695, %v998_v14  ;;  %v1231_v23 = vmul.f32 -1.442695, %v1000_v21 }
 0x6ca   :  { %v954_v18 = vpop.f32.mrf.mxu0  ;;  %v995_v19 = vpop.f32.mrf.mxu1 }
 0x6cb   :  { %1388 = vpow2.f32 %v1230_v17 }
 0x6cc   :  { %1390 = vpow2.f32 %v1231_v23 }
 0x6d6   :  { %v1387_v24 = vpop.eup %1386 }
 0x6d7   :  { %v1004_v26 = vadd.f32 1.0, %v1387_v24 }
 0x6d8   :  { %v1389_v27 = vpop.eup %1388 }
 0x6d9   :  { %1392 = vrcp.f32 %v1004_v26  ;;  %v1010_v28 = vadd.f32 1.0, %v1389_v27  ;;  %v1391_v29 = vpop.eup %1390 }
 0x6da   :  { %1394 = vtanh.f32 %v999_v25  ;;  %v1017_v37 = vadd.f32 1.0, %v1391_v29 }
 0x6db   :  { %1396 = vrcp.f32 %v1010_v28 }
 0x6dc   :  { %1398 = vrcp.f32 %v1017_v37 }
 0x6e6   :  { %v1393_v30 = vpop.eup %1392 }
 0x6e7   :  { %v1395_v31 = vpop.eup %1394 }
 0x6e8   :  { %v1397_v32 = vpop.eup %1396  ;;  %v1021_v52 = vmul.f32 %v1395_v31, %v1393_v30 }
 0x6e9   :  { %v1020_v54 = vmul.f32 %v1397_v32, %v1979_v53  ;;  %v1399_v56 = vpop.eup %1398  ;;  %v1234_v53 = vld [vmem:[%s2109_s0 + $0xe8] sm:$0xff] }
 0x6eb   :  { %v1022_v55 = vadd.f32 %v1021_v52, %v1020_v54 }
 0x6ed   :  { %1400 = vtanh.f32 %v1022_v55 }
 0x6fa   :  { %v1401_v57 = vpop.eup %1400 }
 0x6fb   :  { %v1024_v58 = vmul.f32 %v1401_v57, %v1399_v56 }
 0x6fd   :  { %v1025_v59 = vpack.c.bf16 %v1024_v58, %v1024_v58 }
 0x6ff   :  { %1232 = vst [vmem:[%s2110_s2 + $0x18] sm:$0xf] %v1025_v59  ;;  %1066 = vmatmul.mubr.bf16.vlgmr.msra.gmra.mxu0 %v1025_v59  ;;  %1107 = vmatmul.mubr.bf16.vlgmr.msra.gmra.mxu1 %v1025_v59 }
 0x7bf   :  { %v1067_v6 = vpop.f32.mrf.mxu0  ;;  %v1108_v60 = vpop.f32.mrf.mxu1 }
 0x7c0   :  { %v1115_v61 = vadd.f32 %v1233_v0, %v1067_v6  ;;  %v1117_v46 = vadd.f32 %v1235_v43, %v1108_v60 }
 0x7c1   :  { %v1069_v62 = vpop.f32.mrf.mxu0  ;;  %v1110_v33 = vpop.f32.mrf.mxu1 }
 0x7c2   :  { %v1237_v1 = vmul.f32 -1.442695, %v1115_v61  ;;  %v1116_v34 = vadd.f32 %v1234_v53, %v1069_v62  ;;  %v1118_v42 = vadd.f32 %v1236_v41, %v1110_v33 }
 0x7c3   :  { %v1071_v35 = vpop.f32.mrf.mxu0  ;;  %v1112_v36 = vpop.f32.mrf.mxu1 }
 0x7c4   :  { %1402 = vpow2.f32 %v1237_v1  ;;  %v1238_v38 = vmul.f32 -1.442695, %v1116_v34  ;;  %v1239_v44 = vmul.f32 -1.442695, %v1118_v42 }
 0x7c5   :  { %v1072_v39 = vpop.f32.mrf.mxu0  ;;  %v1113_v40 = vpop.f32.mrf.mxu1 }
 0x7c6   :  { %1404 = vpow2.f32 %v1238_v38 }
 0x7c7   :  { %1406 = vpow2.f32 %v1239_v44 }
 0x7d1   :  { %v1403_v45 = vpop.eup %1402 }
 0x7d2   :  { %v1122_v47 = vadd.f32 1.0, %v1403_v45 }
 0x7d3   :  { %v1405_v48 = vpop.eup %1404 }
 0x7d4   :  { %1408 = vrcp.f32 %v1122_v47  ;;  %v1128_v49 = vadd.f32 1.0, %v1405_v48  ;;  %v1407_v63 = vpop.eup %1406 }
 0x7d5   :  { %1410 = vtanh.f32 %v1117_v46  ;;  %v1135_v3 = vadd.f32 1.0, %v1407_v63 }
 0x7d6   :  { %1412 = vrcp.f32 %v1128_v49 }
 0x7d7   :  { %1414 = vrcp.f32 %v1135_v3 }
 0x7e1   :  { %v1409_v50 = vpop.eup %1408 }
 0x7e2   :  { %v1411_v51 = vpop.eup %1410 }
 0x7e3   :  { %v1413_v2 = vpop.eup %1412  ;;  %v1139_v4 = vmul.f32 %v1411_v51, %v1409_v50 }
 0x7e4   :  { %v1138_v5 = vmul.f32 %v1413_v2, %v1022_v55  ;;  %v1415_v8 = vpop.eup %1414 }
 0x7e6   :  { %v1140_v7 = vadd.f32 %v1139_v4, %v1138_v5 }
 0x7e8   :  { %1416 = vtanh.f32 %v1140_v7 }
 0x7f5   :  { %v1417_v9 = vpop.eup %1416 }
 0x7f6   :  { %v1142_v10 = vmul.f32 %v1417_v9, %v1415_v8 }
 0x7f8   :  { %v1143_v11 = vpack.c.bf16 %v1142_v10, %v1142_v10 }
 0x7fa   :  { %1240 = vst [vmem:[%s2110_s2 + $0x1c] sm:$0xf] %v1143_v11 }

</bundles_post_ra>
